<compile_context>
chip_gen: v7x
topology: tpu7x:2x2x1
jax: 0.10.0
libtpu: 0.0.40
codegen_flags: <defaults>
</compile_context>

<pallas_src>
import functools

import jax
import jax.numpy as jnp
from jax.experimental import pallas as pl
from jax.experimental.pallas import tpu as pltpu


def _rnn_kernel(x_ref, h0_ref, fc1_w_ref, fc1_b_ref,
                w_ih_ref, w_hh_ref, b_ih_ref, b_hh_ref,
                fc2_w_ref, fc2_b_ref, fc3_w_ref, fc3_b_ref,
                y_ref, hn_ref,
                h_state, act_sc, gi_sc,
                *, hidden_dims, gru_layers, time_chunk, batch_pad):
    H = hidden_dims
    L = gru_layers
    TT = time_chunk
    Bp = batch_pad

    c = pl.program_id(0)

    # Initialize the persistent recurrent state on the first chunk.
    @pl.when(c == 0)
    def _():
        h_state[...] = h0_ref[...]

    # fc1 + sigmoid, batched over the whole (TT * Bp) chunk -> one matmul.
    act_sc[...] = jax.nn.sigmoid(
        jnp.dot(x_ref[...], fc1_w_ref[...], preferred_element_type=jnp.float32)
        + fc1_b_ref[...])

    # Layer-major GRU: the input projection gi = a @ W_ih + b_ih is batched
    # over all TT*Bp rows before the recurrence; only h @ W_hh is sequential.
    # PyTorch gate order (r, z, n); b_hh folded into gh before r-gating.
    # TODO(synk): training-mode inter-layer dropout is not implemented
    # (eval-mode forward is a no-op, which is what we match here).
    for l in range(L):
        gi_sc[...] = (
            jnp.dot(act_sc[...], w_ih_ref[l], preferred_element_type=jnp.float32)
            + b_ih_ref[l])

        w_hh_l = w_hh_ref[l]   # (H, 3H), hoisted out of the timestep loop
        b_hh_l = b_hh_ref[l]   # (1, 3H), hoisted

        def step(t, h_prev):
            row = pl.multiple_of(t * Bp, Bp)            # aligned sublane offset
            gi_t = gi_sc[pl.ds(row, Bp), :]             # (Bp, 3H)
            gh = jnp.dot(h_prev, w_hh_l,
                         preferred_element_type=jnp.float32) + b_hh_l
            r = jax.nn.sigmoid(gi_t[:, 0:H] + gh[:, 0:H])
            z = jax.nn.sigmoid(gi_t[:, H:2 * H] + gh[:, H:2 * H])
            n = jnp.tanh(gi_t[:, 2 * H:3 * H] + r * gh[:, 2 * H:3 * H])
            h_new = (1.0 - z) * n + z * h_prev
            act_sc[pl.ds(row, Bp), :] = h_new           # becomes next layer's input
            return h_new

        h_l = jax.lax.fori_loop(0, TT, step, h_state[l], unroll=(TT <= 16))
        h_state[l] = h_l

    # Batched epilogue: fc2 + tanh, fc3 + relu, one slab store per chunk.
    f2 = jnp.tanh(
        jnp.dot(act_sc[...], fc2_w_ref[...], preferred_element_type=jnp.float32)
        + fc2_b_ref[...])
    y_ref[...] = jax.nn.relu(
        jnp.dot(f2, fc3_w_ref[...], preferred_element_type=jnp.float32)
        + fc3_b_ref[...])

    @pl.when(c == pl.num_programs(0) - 1)
    def _():
        hn_ref[...] = h_state[...]


def rnn_forward(x, h0, params, *, hidden_dims, gru_layers, time_chunk=None):
    T, B, D_in = x.shape
    L = gru_layers
    H = hidden_dims

    Bp = max(8, ((B + 7) // 8) * 8)          # pad batch to a sublane multiple
    TT = T if time_chunk is None else time_chunk
    assert T % TT == 0, "time_chunk must divide T"
    C = T // TT

    if Bp != B:
        x = jnp.pad(x, ((0, 0), (0, Bp - B), (0, 0)))
        h0 = jnp.pad(h0, ((0, 0), (0, Bp - B), (0, 0)))
    x2 = x.reshape(T * Bp, D_in)             # flat lane-dense layout

    kernel = functools.partial(_rnn_kernel, hidden_dims=H, gru_layers=L,
                               time_chunk=TT, batch_pad=Bp)

    const = lambda shape: pl.BlockSpec(shape, lambda c: (0,) * len(shape))

    y2, h_next = pl.pallas_call(
        kernel,
        out_shape=(jax.ShapeDtypeStruct((T * Bp, 1), jnp.float32),
                   jax.ShapeDtypeStruct((L, Bp, H), jnp.float32)),
        grid_spec=pltpu.PrefetchScalarGridSpec(
            num_scalar_prefetch=0,
            grid=(C,),
            in_specs=[
                pl.BlockSpec((TT * Bp, D_in), lambda c: (c, 0)),   # x (chunked)
                const((L, Bp, H)),                                 # h0
                const((D_in, H)),                                  # fc1_w
                const((1, H)),                                     # fc1_b
                const((L, H, 3 * H)),                              # w_ih
                const((L, H, 3 * H)),                              # w_hh
                const((L, 1, 3 * H)),                              # b_ih
                const((L, 1, 3 * H)),                              # b_hh
                const((H, H)),                                     # fc2_w
                const((1, H)),                                     # fc2_b
                const((H, 1)),                                     # fc3_w
                const((1, 1)),                                     # fc3_b
            ],
            out_specs=[
                pl.BlockSpec((TT * Bp, 1), lambda c: (c, 0)),      # y (chunked)
                const((L, Bp, H)),                                 # h_next
            ],
            scratch_shapes=[
                pltpu.VMEM((L, Bp, H), jnp.float32),        # persistent h state
                pltpu.VMEM((TT * Bp, H), jnp.float32),      # layer activations
                pltpu.VMEM((TT * Bp, 3 * H), jnp.float32),  # input projections
            ],
        ),
        compiler_params=pltpu.CompilerParams(
            dimension_semantics=("arbitrary",)),
    )(x2, h0,
      params["fc1_w"], params["fc1_b"],
      params["w_ih"], params["w_hh"], params["b_ih"], params["b_hh"],
      params["fc2_w"], params["fc2_b"], params["fc3_w"], params["fc3_b"])

    y = y2.reshape(T, Bp)[:, :B]             # matches torch .squeeze(dim=-1)
    return y, h_next[:, :B, :]


def reference_forward(x, h0, params, *, hidden_dims, gru_layers):
    """Pure-JAX reference mirroring PyTorch semantics (eval mode)."""
    H = hidden_dims
    a = jax.nn.sigmoid(x @ params["fc1_w"] + params["fc1_b"])  # (T, B, H)
    h = [h0[l] for l in range(gru_layers)]
    outs = []
    for t in range(x.shape[0]):
        inp = a[t]
        for l in range(gru_layers):
            gi = inp @ params["w_ih"][l] + params["b_ih"][l]
            gh = h[l] @ params["w_hh"][l] + params["b_hh"][l]
            r = jax.nn.sigmoid(gi[:, :H] + gh[:, :H])
            z = jax.nn.sigmoid(gi[:, H:2 * H] + gh[:, H:2 * H])
            n = jnp.tanh(gi[:, 2 * H:] + r * gh[:, 2 * H:])
            h[l] = (1.0 - z) * n + z * h[l]
            inp = h[l]
        outs.append(inp)
    g = jnp.stack(outs, axis=0)  # (T, B, H)
    f2 = jnp.tanh(g @ params["fc2_w"] + params["fc2_b"])
    y = jax.nn.relu(jnp.squeeze(f2 @ params["fc3_w"] + params["fc3_b"], -1))
    h_next = jnp.stack(h, axis=0)
    return y, h_next


def init_params(key, input_dims, hidden_dims, gru_layers):
    H = hidden_dims
    keys = jax.random.split(key, 12)
    u = lambda k, shape, bound: jax.random.uniform(
        k, shape, jnp.float32, -bound, bound)
    b1 = 1.0 / jnp.sqrt(input_dims)
    bh = 1.0 / jnp.sqrt(H)
    return {
        "fc1_w": u(keys[0], (input_dims, H), b1),
        "fc1_b": u(keys[1], (1, H), b1),
        "w_ih": u(keys[2], (gru_layers, H, 3 * H), bh),
        "w_hh": u(keys[3], (gru_layers, H, 3 * H), bh),
        "b_ih": u(keys[4], (gru_layers, 1, 3 * H), bh),
        "b_hh": u(keys[5], (gru_layers, 1, 3 * H), bh),
        "fc2_w": u(keys[6], (H, H), bh),
        "fc2_b": u(keys[7], (1, H), bh),
        "fc3_w": u(keys[8], (H, 1), bh),
        "fc3_b": u(keys[9], (1, 1), bh),
    }


if __name__ == "__main__":
    T, B, D_IN, H, L = 8, 4, 16, 32, 2

    key = jax.random.PRNGKey(0)
    k_x, k_p = jax.random.split(key)
    x = jax.random.normal(k_x, (T, B, D_IN), jnp.float32)
    h0 = jnp.zeros((L, B, H), jnp.float32)
    params = init_params(k_p, D_IN, H, L)

    y, h_next = rnn_forward(x, h0, params, hidden_dims=H, gru_layers=L)
    y = jax.block_until_ready(y)
    h_next = jax.block_until_ready(h_next)

    y_ref, h_ref = reference_forward(x, h0, params, hidden_dims=H, gru_layers=L)

    assert y.shape == (T, B) and h_next.shape == (L, B, H)
    assert jnp.allclose(y, y_ref, atol=1e-5, rtol=1e-5)
    assert jnp.allclose(h_next, h_ref, atol=1e-5, rtol=1e-5)

    print("KERNEL_OK")
</pallas_src>

<mosaic_0001>
module attributes {stable_mosaic.version = 11 : i64} {
  func.func @_rnn_kernel(%arg0: i32, %arg1: memref<64x16xf32, #tpu.memory_space<vmem>>, %arg2: memref<2x8x32xf32, #tpu.memory_space<vmem>>, %arg3: memref<16x32xf32, #tpu.memory_space<vmem>>, %arg4: memref<1x32xf32, #tpu.memory_space<vmem>>, %arg5: memref<2x32x96xf32, #tpu.memory_space<vmem>>, %arg6: memref<2x32x96xf32, #tpu.memory_space<vmem>>, %arg7: memref<2x1x96xf32, #tpu.memory_space<vmem>>, %arg8: memref<2x1x96xf32, #tpu.memory_space<vmem>>, %arg9: memref<32x32xf32, #tpu.memory_space<vmem>>, %arg10: memref<1x32xf32, #tpu.memory_space<vmem>>, %arg11: memref<32x1xf32, #tpu.memory_space<vmem>>, %arg12: memref<1x1xf32, #tpu.memory_space<vmem>>, %arg13: memref<64x1xf32, #tpu.memory_space<vmem>>, %arg14: memref<2x8x32xf32, #tpu.memory_space<vmem>>, %arg15: memref<2x8x32xf32, #tpu.memory_space<vmem>>, %arg16: memref<64x32xf32, #tpu.memory_space<vmem>>, %arg17: memref<64x96xf32, #tpu.memory_space<vmem>>) attributes {dimension_semantics = [#tpu.dimension_semantics<arbitrary>], iteration_bounds = array<i64: 1>, scalar_prefetch = 0 : i64, scratch_operands = 3 : i64, tpu.core_type = #tpu.core_type<tc>, window_params = [{transform_indices = @transform_0, window_bounds = array<i64: 64, 16>}, {pipeline_mode = #tpu.pipeline_mode<synchronous>, transform_indices = @transform_1, window_bounds = array<i64: 2, 8, 32>}, {pipeline_mode = #tpu.pipeline_mode<synchronous>, transform_indices = @transform_2, window_bounds = array<i64: 16, 32>}, {pipeline_mode = #tpu.pipeline_mode<synchronous>, transform_indices = @transform_3, window_bounds = array<i64: 1, 32>}, {pipeline_mode = #tpu.pipeline_mode<synchronous>, transform_indices = @transform_4, window_bounds = array<i64: 2, 32, 96>}, {pipeline_mode = #tpu.pipeline_mode<synchronous>, transform_indices = @transform_5, window_bounds = array<i64: 2, 32, 96>}, {pipeline_mode = #tpu.pipeline_mode<synchronous>, transform_indices = @transform_6, window_bounds = array<i64: 2, 1, 96>}, {pipeline_mode = #tpu.pipeline_mode<synchronous>, transform_indices = @transform_7, window_bounds = array<i64: 2, 1, 96>}, {pipeline_mode = #tpu.pipeline_mode<synchronous>, transform_indices = @transform_8, window_bounds = array<i64: 32, 32>}, {pipeline_mode = #tpu.pipeline_mode<synchronous>, transform_indices = @transform_9, window_bounds = array<i64: 1, 32>}, {pipeline_mode = #tpu.pipeline_mode<synchronous>, transform_indices = @transform_10, window_bounds = array<i64: 32, 1>}, {pipeline_mode = #tpu.pipeline_mode<synchronous>, transform_indices = @transform_11, window_bounds = array<i64: 1, 1>}, {transform_indices = @transform_12, window_bounds = array<i64: 64, 1>}, {pipeline_mode = #tpu.pipeline_mode<synchronous>, transform_indices = @transform_13, window_bounds = array<i64: 2, 8, 32>}]} {
    %c0_i32 = arith.constant 0 : i32
    %0 = arith.cmpi eq, %arg0, %c0_i32 : i32
    %1 = arith.extui %0 : i1 to i32
    %c0_i32_0 = arith.constant 0 : i32
    %2 = arith.cmpi ne, %1, %c0_i32_0 : i32
    scf.if %2 {
      %c0_193 = arith.constant 0 : index
      %c0_194 = arith.constant 0 : index
      %c0_195 = arith.constant 0 : index
      %629 = vector.load %arg2[%c0_193, %c0_194, %c0_195] : memref<2x8x32xf32, #tpu.memory_space<vmem>>, vector<2x8x32xf32>
      %c0_196 = arith.constant 0 : index
      %c0_197 = arith.constant 0 : index
      %c0_198 = arith.constant 0 : index
      %630 = vector.load %arg15[%c0_196, %c0_197, %c0_198] : memref<2x8x32xf32, #tpu.memory_space<vmem>>, vector<2x8x32xf32>
      tpu.vector_store %arg15[%c0_196, %c0_197, %c0_198], %629 {strides = array<i32>} : memref<2x8x32xf32, #tpu.memory_space<vmem>>, vector<2x8x32xf32>,
    } else {
    }
    %c0 = arith.constant 0 : index
    %c0_1 = arith.constant 0 : index
    %3 = vector.load %arg1[%c0, %c0_1] : memref<64x16xf32, #tpu.memory_space<vmem>>, vector<64x16xf32>
    %c0_2 = arith.constant 0 : index
    %c0_3 = arith.constant 0 : index
    %4 = vector.load %arg3[%c0_2, %c0_3] : memref<16x32xf32, #tpu.memory_space<vmem>>, vector<16x32xf32>
    %cst = arith.constant dense<0.000000e+00> : vector<64x32xf32>
    %5 = tpu.matmul %3, %4, %cst {dimension_numbers = #tpu.dot_dimension_numbers<[1], [0], [0], [1], [0, 0, 1, 1], [], []>} : vector<64x16xf32>, vector<16x32xf32>, vector<64x32xf32> -> vector<64x32xf32>
    %c0_4 = arith.constant 0 : index
    %c0_5 = arith.constant 0 : index
    %6 = vector.load %arg4[%c0_4, %c0_5] : memref<1x32xf32, #tpu.memory_space<vmem>>, vector<1x32xf32>
    %7 = vector.broadcast %6 : vector<1x32xf32> to vector<64x32xf32>
    %8 = arith.addf %5, %7 : vector<64x32xf32>
    %9 = arith.negf %8 : vector<64x32xf32>
    %10 = math.exp %9 : vector<64x32xf32>
    %cst_6 = arith.constant 1.000000e+00 : f32
    %11 = vector.broadcast %cst_6 : f32 to vector<64x32xf32>
    %12 = arith.addf %11, %10 : vector<64x32xf32>
    %13 = arith.divf %11, %12 : vector<64x32xf32>
    %c0_7 = arith.constant 0 : index
    %c0_8 = arith.constant 0 : index
    %14 = vector.load %arg16[%c0_7, %c0_8] : memref<64x32xf32, #tpu.memory_space<vmem>>, vector<64x32xf32>
    tpu.vector_store %arg16[%c0_7, %c0_8], %13 {strides = array<i32>} : memref<64x32xf32, #tpu.memory_space<vmem>>, vector<64x32xf32>,
    %c0_9 = arith.constant 0 : index
    %c0_10 = arith.constant 0 : index
    %15 = vector.load %arg16[%c0_9, %c0_10] : memref<64x32xf32, #tpu.memory_space<vmem>>, vector<64x32xf32>
    %c0_11 = arith.constant 0 : index
    %c0_12 = arith.constant 0 : index
    %c0_13 = arith.constant 0 : index
    %16 = vector.load %arg5[%c0_11, %c0_12, %c0_13] : memref<2x32x96xf32, #tpu.memory_space<vmem>>, vector<1x32x96xf32>
    %17 = vector.shape_cast %16 : vector<1x32x96xf32> to vector<32x96xf32>
    %cst_14 = arith.constant dense<0.000000e+00> : vector<64x96xf32>
    %18 = tpu.matmul %15, %17, %cst_14 {dimension_numbers = #tpu.dot_dimension_numbers<[1], [0], [0], [1], [0, 0, 1, 1], [], []>} : vector<64x32xf32>, vector<32x96xf32>, vector<64x96xf32> -> vector<64x96xf32>
    %c0_15 = arith.constant 0 : index
    %c0_16 = arith.constant 0 : index
    %c0_17 = arith.constant 0 : index
    %19 = vector.load %arg7[%c0_15, %c0_16, %c0_17] : memref<2x1x96xf32, #tpu.memory_space<vmem>>, vector<1x1x96xf32>
    %20 = vector.shape_cast %19 : vector<1x1x96xf32> to vector<1x96xf32>
    %21 = vector.broadcast %20 : vector<1x96xf32> to vector<64x96xf32>
    %22 = arith.addf %18, %21 : vector<64x96xf32>
    %c0_18 = arith.constant 0 : index
    %c0_19 = arith.constant 0 : index
    %23 = vector.load %arg17[%c0_18, %c0_19] : memref<64x96xf32, #tpu.memory_space<vmem>>, vector<64x96xf32>
    tpu.vector_store %arg17[%c0_18, %c0_19], %22 {strides = array<i32>} : memref<64x96xf32, #tpu.memory_space<vmem>>, vector<64x96xf32>,
    %c0_20 = arith.constant 0 : index
    %c0_21 = arith.constant 0 : index
    %c0_22 = arith.constant 0 : index
    %24 = vector.load %arg6[%c0_20, %c0_21, %c0_22] : memref<2x32x96xf32, #tpu.memory_space<vmem>>, vector<1x32x96xf32>
    %25 = vector.shape_cast %24 : vector<1x32x96xf32> to vector<32x96xf32>
    %c0_23 = arith.constant 0 : index
    %c0_24 = arith.constant 0 : index
    %c0_25 = arith.constant 0 : index
    %26 = vector.load %arg8[%c0_23, %c0_24, %c0_25] : memref<2x1x96xf32, #tpu.memory_space<vmem>>, vector<1x1x96xf32>
    %27 = vector.shape_cast %26 : vector<1x1x96xf32> to vector<1x96xf32>
    %c0_26 = arith.constant 0 : index
    %c0_27 = arith.constant 0 : index
    %c0_28 = arith.constant 0 : index
    %28 = vector.load %arg15[%c0_26, %c0_27, %c0_28] : memref<2x8x32xf32, #tpu.memory_space<vmem>>, vector<1x8x32xf32>
    %29 = vector.shape_cast %28 : vector<1x8x32xf32> to vector<8x32xf32>
    %c0_i32_29 = arith.constant 0 : i32
    %c8_i32 = arith.constant 8 : i32
    %30 = arith.muli %c0_i32_29, %c8_i32 : i32
    %31 = tpu.assume_multiple %30, 8 : i32
    %32 = arith.index_cast %31 : i32 to index
    %c0_30 = arith.constant 0 : index
    %33 = vector.load %arg17[%32, %c0_30] : memref<64x96xf32, #tpu.memory_space<vmem>>, vector<8x96xf32>
    %cst_31 = arith.constant dense<0.000000e+00> : vector<8x96xf32>
    %34 = tpu.matmul %29, %25, %cst_31 {dimension_numbers = #tpu.dot_dimension_numbers<[1], [0], [0], [1], [0, 0, 1, 1], [], []>} : vector<8x32xf32>, vector<32x96xf32>, vector<8x96xf32> -> vector<8x96xf32>
    %35 = vector.broadcast %27 : vector<1x96xf32> to vector<8x96xf32>
    %36 = arith.addf %34, %35 : vector<8x96xf32>
    %37 = vector.extract_strided_slice %33 {offsets = [0, 0], sizes = [8, 32], strides = [1, 1]} : vector<8x96xf32> to vector<8x32xf32>
    %38 = vector.extract_strided_slice %36 {offsets = [0, 0], sizes = [8, 32], strides = [1, 1]} : vector<8x96xf32> to vector<8x32xf32>
    %39 = arith.addf %37, %38 : vector<8x32xf32>
    %40 = arith.negf %39 : vector<8x32xf32>
    %41 = math.exp %40 : vector<8x32xf32>
    %cst_32 = arith.constant 1.000000e+00 : f32
    %42 = vector.broadcast %cst_32 : f32 to vector<8x32xf32>
    %43 = arith.addf %42, %41 : vector<8x32xf32>
    %44 = arith.divf %42, %43 : vector<8x32xf32>
    %45 = vector.extract_strided_slice %33 {offsets = [0, 32], sizes = [8, 32], strides = [1, 1]} : vector<8x96xf32> to vector<8x32xf32>
    %46 = vector.extract_strided_slice %36 {offsets = [0, 32], sizes = [8, 32], strides = [1, 1]} : vector<8x96xf32> to vector<8x32xf32>
    %47 = arith.addf %45, %46 : vector<8x32xf32>
    %48 = arith.negf %47 : vector<8x32xf32>
    %49 = math.exp %48 : vector<8x32xf32>
    %cst_33 = arith.constant 1.000000e+00 : f32
    %50 = vector.broadcast %cst_33 : f32 to vector<8x32xf32>
    %51 = arith.addf %50, %49 : vector<8x32xf32>
    %52 = arith.divf %50, %51 : vector<8x32xf32>
    %53 = vector.extract_strided_slice %33 {offsets = [0, 64], sizes = [8, 32], strides = [1, 1]} : vector<8x96xf32> to vector<8x32xf32>
    %54 = vector.extract_strided_slice %36 {offsets = [0, 64], sizes = [8, 32], strides = [1, 1]} : vector<8x96xf32> to vector<8x32xf32>
    %55 = arith.mulf %44, %54 : vector<8x32xf32>
    %56 = arith.addf %53, %55 : vector<8x32xf32>
    %57 = math.tanh %56 : vector<8x32xf32>
    %cst_34 = arith.constant 1.000000e+00 : f32
    %58 = vector.broadcast %cst_34 : f32 to vector<8x32xf32>
    %59 = arith.subf %58, %52 : vector<8x32xf32>
    %60 = arith.mulf %59, %57 : vector<8x32xf32>
    %61 = arith.mulf %52, %29 : vector<8x32xf32>
    %62 = arith.addf %60, %61 : vector<8x32xf32>
    %63 = arith.index_cast %31 : i32 to index
    %c0_35 = arith.constant 0 : index
    %64 = vector.load %arg16[%63, %c0_35] : memref<64x32xf32, #tpu.memory_space<vmem>>, vector<8x32xf32>
    tpu.vector_store %arg16[%63, %c0_35], %62 {strides = array<i32>} : memref<64x32xf32, #tpu.memory_space<vmem>>, vector<8x32xf32>,
    %c1_i32 = arith.constant 1 : i32
    %c8_i32_36 = arith.constant 8 : i32
    %65 = arith.muli %c1_i32, %c8_i32_36 : i32
    %66 = tpu.assume_multiple %65, 8 : i32
    %67 = arith.index_cast %66 : i32 to index
    %c0_37 = arith.constant 0 : index
    %68 = vector.load %arg17[%67, %c0_37] : memref<64x96xf32, #tpu.memory_space<vmem>>, vector<8x96xf32>
    %cst_38 = arith.constant dense<0.000000e+00> : vector<8x96xf32>
    %69 = tpu.matmul %62, %25, %cst_38 {dimension_numbers = #tpu.dot_dimension_numbers<[1], [0], [0], [1], [0, 0, 1, 1], [], []>} : vector<8x32xf32>, vector<32x96xf32>, vector<8x96xf32> -> vector<8x96xf32>
    %70 = vector.broadcast %27 : vector<1x96xf32> to vector<8x96xf32>
    %71 = arith.addf %69, %70 : vector<8x96xf32>
    %72 = vector.extract_strided_slice %68 {offsets = [0, 0], sizes = [8, 32], strides = [1, 1]} : vector<8x96xf32> to vector<8x32xf32>
    %73 = vector.extract_strided_slice %71 {offsets = [0, 0], sizes = [8, 32], strides = [1, 1]} : vector<8x96xf32> to vector<8x32xf32>
    %74 = arith.addf %72, %73 : vector<8x32xf32>
    %75 = arith.negf %74 : vector<8x32xf32>
    %76 = math.exp %75 : vector<8x32xf32>
    %cst_39 = arith.constant 1.000000e+00 : f32
    %77 = vector.broadcast %cst_39 : f32 to vector<8x32xf32>
    %78 = arith.addf %77, %76 : vector<8x32xf32>
    %79 = arith.divf %77, %78 : vector<8x32xf32>
    %80 = vector.extract_strided_slice %68 {offsets = [0, 32], sizes = [8, 32], strides = [1, 1]} : vector<8x96xf32> to vector<8x32xf32>
    %81 = vector.extract_strided_slice %71 {offsets = [0, 32], sizes = [8, 32], strides = [1, 1]} : vector<8x96xf32> to vector<8x32xf32>
    %82 = arith.addf %80, %81 : vector<8x32xf32>
    %83 = arith.negf %82 : vector<8x32xf32>
    %84 = math.exp %83 : vector<8x32xf32>
    %cst_40 = arith.constant 1.000000e+00 : f32
    %85 = vector.broadcast %cst_40 : f32 to vector<8x32xf32>
    %86 = arith.addf %85, %84 : vector<8x32xf32>
    %87 = arith.divf %85, %86 : vector<8x32xf32>
    %88 = vector.extract_strided_slice %68 {offsets = [0, 64], sizes = [8, 32], strides = [1, 1]} : vector<8x96xf32> to vector<8x32xf32>
    %89 = vector.extract_strided_slice %71 {offsets = [0, 64], sizes = [8, 32], strides = [1, 1]} : vector<8x96xf32> to vector<8x32xf32>
    %90 = arith.mulf %79, %89 : vector<8x32xf32>
    %91 = arith.addf %88, %90 : vector<8x32xf32>
    %92 = math.tanh %91 : vector<8x32xf32>
    %cst_41 = arith.constant 1.000000e+00 : f32
    %93 = vector.broadcast %cst_41 : f32 to vector<8x32xf32>
    %94 = arith.subf %93, %87 : vector<8x32xf32>
    %95 = arith.mulf %94, %92 : vector<8x32xf32>
    %96 = arith.mulf %87, %62 : vector<8x32xf32>
    %97 = arith.addf %95, %96 : vector<8x32xf32>
    %98 = arith.index_cast %66 : i32 to index
    %c0_42 = arith.constant 0 : index
    %99 = vector.load %arg16[%98, %c0_42] : memref<64x32xf32, #tpu.memory_space<vmem>>, vector<8x32xf32>
    tpu.vector_store %arg16[%98, %c0_42], %97 {strides = array<i32>} : memref<64x32xf32, #tpu.memory_space<vmem>>, vector<8x32xf32>,
    %c2_i32 = arith.constant 2 : i32
    %c8_i32_43 = arith.constant 8 : i32
    %100 = arith.muli %c2_i32, %c8_i32_43 : i32
    %101 = tpu.assume_multiple %100, 8 : i32
    %102 = arith.index_cast %101 : i32 to index
    %c0_44 = arith.constant 0 : index
    %103 = vector.load %arg17[%102, %c0_44] : memref<64x96xf32, #tpu.memory_space<vmem>>, vector<8x96xf32>
    %cst_45 = arith.constant dense<0.000000e+00> : vector<8x96xf32>
    %104 = tpu.matmul %97, %25, %cst_45 {dimension_numbers = #tpu.dot_dimension_numbers<[1], [0], [0], [1], [0, 0, 1, 1], [], []>} : vector<8x32xf32>, vector<32x96xf32>, vector<8x96xf32> -> vector<8x96xf32>
    %105 = vector.broadcast %27 : vector<1x96xf32> to vector<8x96xf32>
    %106 = arith.addf %104, %105 : vector<8x96xf32>
    %107 = vector.extract_strided_slice %103 {offsets = [0, 0], sizes = [8, 32], strides = [1, 1]} : vector<8x96xf32> to vector<8x32xf32>
    %108 = vector.extract_strided_slice %106 {offsets = [0, 0], sizes = [8, 32], strides = [1, 1]} : vector<8x96xf32> to vector<8x32xf32>
    %109 = arith.addf %107, %108 : vector<8x32xf32>
    %110 = arith.negf %109 : vector<8x32xf32>
    %111 = math.exp %110 : vector<8x32xf32>
    %cst_46 = arith.constant 1.000000e+00 : f32
    %112 = vector.broadcast %cst_46 : f32 to vector<8x32xf32>
    %113 = arith.addf %112, %111 : vector<8x32xf32>
    %114 = arith.divf %112, %113 : vector<8x32xf32>
    %115 = vector.extract_strided_slice %103 {offsets = [0, 32], sizes = [8, 32], strides = [1, 1]} : vector<8x96xf32> to vector<8x32xf32>
    %116 = vector.extract_strided_slice %106 {offsets = [0, 32], sizes = [8, 32], strides = [1, 1]} : vector<8x96xf32> to vector<8x32xf32>
    %117 = arith.addf %115, %116 : vector<8x32xf32>
    %118 = arith.negf %117 : vector<8x32xf32>
    %119 = math.exp %118 : vector<8x32xf32>
    %cst_47 = arith.constant 1.000000e+00 : f32
    %120 = vector.broadcast %cst_47 : f32 to vector<8x32xf32>
    %121 = arith.addf %120, %119 : vector<8x32xf32>
    %122 = arith.divf %120, %121 : vector<8x32xf32>
    %123 = vector.extract_strided_slice %103 {offsets = [0, 64], sizes = [8, 32], strides = [1, 1]} : vector<8x96xf32> to vector<8x32xf32>
    %124 = vector.extract_strided_slice %106 {offsets = [0, 64], sizes = [8, 32], strides = [1, 1]} : vector<8x96xf32> to vector<8x32xf32>
    %125 = arith.mulf %114, %124 : vector<8x32xf32>
    %126 = arith.addf %123, %125 : vector<8x32xf32>
    %127 = math.tanh %126 : vector<8x32xf32>
    %cst_48 = arith.constant 1.000000e+00 : f32
    %128 = vector.broadcast %cst_48 : f32 to vector<8x32xf32>
    %129 = arith.subf %128, %122 : vector<8x32xf32>
    %130 = arith.mulf %129, %127 : vector<8x32xf32>
    %131 = arith.mulf %122, %97 : vector<8x32xf32>
    %132 = arith.addf %130, %131 : vector<8x32xf32>
    %133 = arith.index_cast %101 : i32 to index
    %c0_49 = arith.constant 0 : index
    %134 = vector.load %arg16[%133, %c0_49] : memref<64x32xf32, #tpu.memory_space<vmem>>, vector<8x32xf32>
    tpu.vector_store %arg16[%133, %c0_49], %132 {strides = array<i32>} : memref<64x32xf32, #tpu.memory_space<vmem>>, vector<8x32xf32>,
    %c3_i32 = arith.constant 3 : i32
    %c8_i32_50 = arith.constant 8 : i32
    %135 = arith.muli %c3_i32, %c8_i32_50 : i32
    %136 = tpu.assume_multiple %135, 8 : i32
    %137 = arith.index_cast %136 : i32 to index
    %c0_51 = arith.constant 0 : index
    %138 = vector.load %arg17[%137, %c0_51] : memref<64x96xf32, #tpu.memory_space<vmem>>, vector<8x96xf32>
    %cst_52 = arith.constant dense<0.000000e+00> : vector<8x96xf32>
    %139 = tpu.matmul %132, %25, %cst_52 {dimension_numbers = #tpu.dot_dimension_numbers<[1], [0], [0], [1], [0, 0, 1, 1], [], []>} : vector<8x32xf32>, vector<32x96xf32>, vector<8x96xf32> -> vector<8x96xf32>
    %140 = vector.broadcast %27 : vector<1x96xf32> to vector<8x96xf32>
    %141 = arith.addf %139, %140 : vector<8x96xf32>
    %142 = vector.extract_strided_slice %138 {offsets = [0, 0], sizes = [8, 32], strides = [1, 1]} : vector<8x96xf32> to vector<8x32xf32>
    %143 = vector.extract_strided_slice %141 {offsets = [0, 0], sizes = [8, 32], strides = [1, 1]} : vector<8x96xf32> to vector<8x32xf32>
    %144 = arith.addf %142, %143 : vector<8x32xf32>
    %145 = arith.negf %144 : vector<8x32xf32>
    %146 = math.exp %145 : vector<8x32xf32>
    %cst_53 = arith.constant 1.000000e+00 : f32
    %147 = vector.broadcast %cst_53 : f32 to vector<8x32xf32>
    %148 = arith.addf %147, %146 : vector<8x32xf32>
    %149 = arith.divf %147, %148 : vector<8x32xf32>
    %150 = vector.extract_strided_slice %138 {offsets = [0, 32], sizes = [8, 32], strides = [1, 1]} : vector<8x96xf32> to vector<8x32xf32>
    %151 = vector.extract_strided_slice %141 {offsets = [0, 32], sizes = [8, 32], strides = [1, 1]} : vector<8x96xf32> to vector<8x32xf32>
    %152 = arith.addf %150, %151 : vector<8x32xf32>
    %153 = arith.negf %152 : vector<8x32xf32>
    %154 = math.exp %153 : vector<8x32xf32>
    %cst_54 = arith.constant 1.000000e+00 : f32
    %155 = vector.broadcast %cst_54 : f32 to vector<8x32xf32>
    %156 = arith.addf %155, %154 : vector<8x32xf32>
    %157 = arith.divf %155, %156 : vector<8x32xf32>
    %158 = vector.extract_strided_slice %138 {offsets = [0, 64], sizes = [8, 32], strides = [1, 1]} : vector<8x96xf32> to vector<8x32xf32>
    %159 = vector.extract_strided_slice %141 {offsets = [0, 64], sizes = [8, 32], strides = [1, 1]} : vector<8x96xf32> to vector<8x32xf32>
    %160 = arith.mulf %149, %159 : vector<8x32xf32>
    %161 = arith.addf %158, %160 : vector<8x32xf32>
    %162 = math.tanh %161 : vector<8x32xf32>
    %cst_55 = arith.constant 1.000000e+00 : f32
    %163 = vector.broadcast %cst_55 : f32 to vector<8x32xf32>
    %164 = arith.subf %163, %157 : vector<8x32xf32>
    %165 = arith.mulf %164, %162 : vector<8x32xf32>
    %166 = arith.mulf %157, %132 : vector<8x32xf32>
    %167 = arith.addf %165, %166 : vector<8x32xf32>
    %168 = arith.index_cast %136 : i32 to index
    %c0_56 = arith.constant 0 : index
    %169 = vector.load %arg16[%168, %c0_56] : memref<64x32xf32, #tpu.memory_space<vmem>>, vector<8x32xf32>
    tpu.vector_store %arg16[%168, %c0_56], %167 {strides = array<i32>} : memref<64x32xf32, #tpu.memory_space<vmem>>, vector<8x32xf32>,
    %c4_i32 = arith.constant 4 : i32
    %c8_i32_57 = arith.constant 8 : i32
    %170 = arith.muli %c4_i32, %c8_i32_57 : i32
    %171 = tpu.assume_multiple %170, 8 : i32
    %172 = arith.index_cast %171 : i32 to index
    %c0_58 = arith.constant 0 : index
    %173 = vector.load %arg17[%172, %c0_58] : memref<64x96xf32, #tpu.memory_space<vmem>>, vector<8x96xf32>
    %cst_59 = arith.constant dense<0.000000e+00> : vector<8x96xf32>
    %174 = tpu.matmul %167, %25, %cst_59 {dimension_numbers = #tpu.dot_dimension_numbers<[1], [0], [0], [1], [0, 0, 1, 1], [], []>} : vector<8x32xf32>, vector<32x96xf32>, vector<8x96xf32> -> vector<8x96xf32>
    %175 = vector.broadcast %27 : vector<1x96xf32> to vector<8x96xf32>
    %176 = arith.addf %174, %175 : vector<8x96xf32>
    %177 = vector.extract_strided_slice %173 {offsets = [0, 0], sizes = [8, 32], strides = [1, 1]} : vector<8x96xf32> to vector<8x32xf32>
    %178 = vector.extract_strided_slice %176 {offsets = [0, 0], sizes = [8, 32], strides = [1, 1]} : vector<8x96xf32> to vector<8x32xf32>
    %179 = arith.addf %177, %178 : vector<8x32xf32>
    %180 = arith.negf %179 : vector<8x32xf32>
    %181 = math.exp %180 : vector<8x32xf32>
    %cst_60 = arith.constant 1.000000e+00 : f32
    %182 = vector.broadcast %cst_60 : f32 to vector<8x32xf32>
    %183 = arith.addf %182, %181 : vector<8x32xf32>
    %184 = arith.divf %182, %183 : vector<8x32xf32>
    %185 = vector.extract_strided_slice %173 {offsets = [0, 32], sizes = [8, 32], strides = [1, 1]} : vector<8x96xf32> to vector<8x32xf32>
    %186 = vector.extract_strided_slice %176 {offsets = [0, 32], sizes = [8, 32], strides = [1, 1]} : vector<8x96xf32> to vector<8x32xf32>
    %187 = arith.addf %185, %186 : vector<8x32xf32>
    %188 = arith.negf %187 : vector<8x32xf32>
    %189 = math.exp %188 : vector<8x32xf32>
    %cst_61 = arith.constant 1.000000e+00 : f32
    %190 = vector.broadcast %cst_61 : f32 to vector<8x32xf32>
    %191 = arith.addf %190, %189 : vector<8x32xf32>
    %192 = arith.divf %190, %191 : vector<8x32xf32>
    %193 = vector.extract_strided_slice %173 {offsets = [0, 64], sizes = [8, 32], strides = [1, 1]} : vector<8x96xf32> to vector<8x32xf32>
    %194 = vector.extract_strided_slice %176 {offsets = [0, 64], sizes = [8, 32], strides = [1, 1]} : vector<8x96xf32> to vector<8x32xf32>
    %195 = arith.mulf %184, %194 : vector<8x32xf32>
    %196 = arith.addf %193, %195 : vector<8x32xf32>
    %197 = math.tanh %196 : vector<8x32xf32>
    %cst_62 = arith.constant 1.000000e+00 : f32
    %198 = vector.broadcast %cst_62 : f32 to vector<8x32xf32>
    %199 = arith.subf %198, %192 : vector<8x32xf32>
    %200 = arith.mulf %199, %197 : vector<8x32xf32>
    %201 = arith.mulf %192, %167 : vector<8x32xf32>
    %202 = arith.addf %200, %201 : vector<8x32xf32>
    %203 = arith.index_cast %171 : i32 to index
    %c0_63 = arith.constant 0 : index
    %204 = vector.load %arg16[%203, %c0_63] : memref<64x32xf32, #tpu.memory_space<vmem>>, vector<8x32xf32>
    tpu.vector_store %arg16[%203, %c0_63], %202 {strides = array<i32>} : memref<64x32xf32, #tpu.memory_space<vmem>>, vector<8x32xf32>,
    %c5_i32 = arith.constant 5 : i32
    %c8_i32_64 = arith.constant 8 : i32
    %205 = arith.muli %c5_i32, %c8_i32_64 : i32
    %206 = tpu.assume_multiple %205, 8 : i32
    %207 = arith.index_cast %206 : i32 to index
    %c0_65 = arith.constant 0 : index
    %208 = vector.load %arg17[%207, %c0_65] : memref<64x96xf32, #tpu.memory_space<vmem>>, vector<8x96xf32>
    %cst_66 = arith.constant dense<0.000000e+00> : vector<8x96xf32>
    %209 = tpu.matmul %202, %25, %cst_66 {dimension_numbers = #tpu.dot_dimension_numbers<[1], [0], [0], [1], [0, 0, 1, 1], [], []>} : vector<8x32xf32>, vector<32x96xf32>, vector<8x96xf32> -> vector<8x96xf32>
    %210 = vector.broadcast %27 : vector<1x96xf32> to vector<8x96xf32>
    %211 = arith.addf %209, %210 : vector<8x96xf32>
    %212 = vector.extract_strided_slice %208 {offsets = [0, 0], sizes = [8, 32], strides = [1, 1]} : vector<8x96xf32> to vector<8x32xf32>
    %213 = vector.extract_strided_slice %211 {offsets = [0, 0], sizes = [8, 32], strides = [1, 1]} : vector<8x96xf32> to vector<8x32xf32>
    %214 = arith.addf %212, %213 : vector<8x32xf32>
    %215 = arith.negf %214 : vector<8x32xf32>
    %216 = math.exp %215 : vector<8x32xf32>
    %cst_67 = arith.constant 1.000000e+00 : f32
    %217 = vector.broadcast %cst_67 : f32 to vector<8x32xf32>
    %218 = arith.addf %217, %216 : vector<8x32xf32>
    %219 = arith.divf %217, %218 : vector<8x32xf32>
    %220 = vector.extract_strided_slice %208 {offsets = [0, 32], sizes = [8, 32], strides = [1, 1]} : vector<8x96xf32> to vector<8x32xf32>
    %221 = vector.extract_strided_slice %211 {offsets = [0, 32], sizes = [8, 32], strides = [1, 1]} : vector<8x96xf32> to vector<8x32xf32>
    %222 = arith.addf %220, %221 : vector<8x32xf32>
    %223 = arith.negf %222 : vector<8x32xf32>
    %224 = math.exp %223 : vector<8x32xf32>
    %cst_68 = arith.constant 1.000000e+00 : f32
    %225 = vector.broadcast %cst_68 : f32 to vector<8x32xf32>
    %226 = arith.addf %225, %224 : vector<8x32xf32>
    %227 = arith.divf %225, %226 : vector<8x32xf32>
    %228 = vector.extract_strided_slice %208 {offsets = [0, 64], sizes = [8, 32], strides = [1, 1]} : vector<8x96xf32> to vector<8x32xf32>
    %229 = vector.extract_strided_slice %211 {offsets = [0, 64], sizes = [8, 32], strides = [1, 1]} : vector<8x96xf32> to vector<8x32xf32>
    %230 = arith.mulf %219, %229 : vector<8x32xf32>
    %231 = arith.addf %228, %230 : vector<8x32xf32>
    %232 = math.tanh %231 : vector<8x32xf32>
    %cst_69 = arith.constant 1.000000e+00 : f32
    %233 = vector.broadcast %cst_69 : f32 to vector<8x32xf32>
    %234 = arith.subf %233, %227 : vector<8x32xf32>
    %235 = arith.mulf %234, %232 : vector<8x32xf32>
    %236 = arith.mulf %227, %202 : vector<8x32xf32>
    %237 = arith.addf %235, %236 : vector<8x32xf32>
    %238 = arith.index_cast %206 : i32 to index
    %c0_70 = arith.constant 0 : index
    %239 = vector.load %arg16[%238, %c0_70] : memref<64x32xf32, #tpu.memory_space<vmem>>, vector<8x32xf32>
    tpu.vector_store %arg16[%238, %c0_70], %237 {strides = array<i32>} : memref<64x32xf32, #tpu.memory_space<vmem>>, vector<8x32xf32>,
    %c6_i32 = arith.constant 6 : i32
    %c8_i32_71 = arith.constant 8 : i32
    %240 = arith.muli %c6_i32, %c8_i32_71 : i32
    %241 = tpu.assume_multiple %240, 8 : i32
    %242 = arith.index_cast %241 : i32 to index
    %c0_72 = arith.constant 0 : index
    %243 = vector.load %arg17[%242, %c0_72] : memref<64x96xf32, #tpu.memory_space<vmem>>, vector<8x96xf32>
    %cst_73 = arith.constant dense<0.000000e+00> : vector<8x96xf32>
    %244 = tpu.matmul %237, %25, %cst_73 {dimension_numbers = #tpu.dot_dimension_numbers<[1], [0], [0], [1], [0, 0, 1, 1], [], []>} : vector<8x32xf32>, vector<32x96xf32>, vector<8x96xf32> -> vector<8x96xf32>
    %245 = vector.broadcast %27 : vector<1x96xf32> to vector<8x96xf32>
    %246 = arith.addf %244, %245 : vector<8x96xf32>
    %247 = vector.extract_strided_slice %243 {offsets = [0, 0], sizes = [8, 32], strides = [1, 1]} : vector<8x96xf32> to vector<8x32xf32>
    %248 = vector.extract_strided_slice %246 {offsets = [0, 0], sizes = [8, 32], strides = [1, 1]} : vector<8x96xf32> to vector<8x32xf32>
    %249 = arith.addf %247, %248 : vector<8x32xf32>
    %250 = arith.negf %249 : vector<8x32xf32>
    %251 = math.exp %250 : vector<8x32xf32>
    %cst_74 = arith.constant 1.000000e+00 : f32
    %252 = vector.broadcast %cst_74 : f32 to vector<8x32xf32>
    %253 = arith.addf %252, %251 : vector<8x32xf32>
    %254 = arith.divf %252, %253 : vector<8x32xf32>
    %255 = vector.extract_strided_slice %243 {offsets = [0, 32], sizes = [8, 32], strides = [1, 1]} : vector<8x96xf32> to vector<8x32xf32>
    %256 = vector.extract_strided_slice %246 {offsets = [0, 32], sizes = [8, 32], strides = [1, 1]} : vector<8x96xf32> to vector<8x32xf32>
    %257 = arith.addf %255, %256 : vector<8x32xf32>
    %258 = arith.negf %257 : vector<8x32xf32>
    %259 = math.exp %258 : vector<8x32xf32>
    %cst_75 = arith.constant 1.000000e+00 : f32
    %260 = vector.broadcast %cst_75 : f32 to vector<8x32xf32>
    %261 = arith.addf %260, %259 : vector<8x32xf32>
    %262 = arith.divf %260, %261 : vector<8x32xf32>
    %263 = vector.extract_strided_slice %243 {offsets = [0, 64], sizes = [8, 32], strides = [1, 1]} : vector<8x96xf32> to vector<8x32xf32>
    %264 = vector.extract_strided_slice %246 {offsets = [0, 64], sizes = [8, 32], strides = [1, 1]} : vector<8x96xf32> to vector<8x32xf32>
    %265 = arith.mulf %254, %264 : vector<8x32xf32>
    %266 = arith.addf %263, %265 : vector<8x32xf32>
    %267 = math.tanh %266 : vector<8x32xf32>
    %cst_76 = arith.constant 1.000000e+00 : f32
    %268 = vector.broadcast %cst_76 : f32 to vector<8x32xf32>
    %269 = arith.subf %268, %262 : vector<8x32xf32>
    %270 = arith.mulf %269, %267 : vector<8x32xf32>
    %271 = arith.mulf %262, %237 : vector<8x32xf32>
    %272 = arith.addf %270, %271 : vector<8x32xf32>
    %273 = arith.index_cast %241 : i32 to index
    %c0_77 = arith.constant 0 : index
    %274 = vector.load %arg16[%273, %c0_77] : memref<64x32xf32, #tpu.memory_space<vmem>>, vector<8x32xf32>
    tpu.vector_store %arg16[%273, %c0_77], %272 {strides = array<i32>} : memref<64x32xf32, #tpu.memory_space<vmem>>, vector<8x32xf32>,
    %c7_i32 = arith.constant 7 : i32
    %c8_i32_78 = arith.constant 8 : i32
    %275 = arith.muli %c7_i32, %c8_i32_78 : i32
    %276 = tpu.assume_multiple %275, 8 : i32
    %277 = arith.index_cast %276 : i32 to index
    %c0_79 = arith.constant 0 : index
    %278 = vector.load %arg17[%277, %c0_79] : memref<64x96xf32, #tpu.memory_space<vmem>>, vector<8x96xf32>
    %cst_80 = arith.constant dense<0.000000e+00> : vector<8x96xf32>
    %279 = tpu.matmul %272, %25, %cst_80 {dimension_numbers = #tpu.dot_dimension_numbers<[1], [0], [0], [1], [0, 0, 1, 1], [], []>} : vector<8x32xf32>, vector<32x96xf32>, vector<8x96xf32> -> vector<8x96xf32>
    %280 = vector.broadcast %27 : vector<1x96xf32> to vector<8x96xf32>
    %281 = arith.addf %279, %280 : vector<8x96xf32>
    %282 = vector.extract_strided_slice %278 {offsets = [0, 0], sizes = [8, 32], strides = [1, 1]} : vector<8x96xf32> to vector<8x32xf32>
    %283 = vector.extract_strided_slice %281 {offsets = [0, 0], sizes = [8, 32], strides = [1, 1]} : vector<8x96xf32> to vector<8x32xf32>
    %284 = arith.addf %282, %283 : vector<8x32xf32>
    %285 = arith.negf %284 : vector<8x32xf32>
    %286 = math.exp %285 : vector<8x32xf32>
    %cst_81 = arith.constant 1.000000e+00 : f32
    %287 = vector.broadcast %cst_81 : f32 to vector<8x32xf32>
    %288 = arith.addf %287, %286 : vector<8x32xf32>
    %289 = arith.divf %287, %288 : vector<8x32xf32>
    %290 = vector.extract_strided_slice %278 {offsets = [0, 32], sizes = [8, 32], strides = [1, 1]} : vector<8x96xf32> to vector<8x32xf32>
    %291 = vector.extract_strided_slice %281 {offsets = [0, 32], sizes = [8, 32], strides = [1, 1]} : vector<8x96xf32> to vector<8x32xf32>
    %292 = arith.addf %290, %291 : vector<8x32xf32>
    %293 = arith.negf %292 : vector<8x32xf32>
    %294 = math.exp %293 : vector<8x32xf32>
    %cst_82 = arith.constant 1.000000e+00 : f32
    %295 = vector.broadcast %cst_82 : f32 to vector<8x32xf32>
    %296 = arith.addf %295, %294 : vector<8x32xf32>
    %297 = arith.divf %295, %296 : vector<8x32xf32>
    %298 = vector.extract_strided_slice %278 {offsets = [0, 64], sizes = [8, 32], strides = [1, 1]} : vector<8x96xf32> to vector<8x32xf32>
    %299 = vector.extract_strided_slice %281 {offsets = [0, 64], sizes = [8, 32], strides = [1, 1]} : vector<8x96xf32> to vector<8x32xf32>
    %300 = arith.mulf %289, %299 : vector<8x32xf32>
    %301 = arith.addf %298, %300 : vector<8x32xf32>
    %302 = math.tanh %301 : vector<8x32xf32>
    %cst_83 = arith.constant 1.000000e+00 : f32
    %303 = vector.broadcast %cst_83 : f32 to vector<8x32xf32>
    %304 = arith.subf %303, %297 : vector<8x32xf32>
    %305 = arith.mulf %304, %302 : vector<8x32xf32>
    %306 = arith.mulf %297, %272 : vector<8x32xf32>
    %307 = arith.addf %305, %306 : vector<8x32xf32>
    %308 = arith.index_cast %276 : i32 to index
    %c0_84 = arith.constant 0 : index
    %309 = vector.load %arg16[%308, %c0_84] : memref<64x32xf32, #tpu.memory_space<vmem>>, vector<8x32xf32>
    tpu.vector_store %arg16[%308, %c0_84], %307 {strides = array<i32>} : memref<64x32xf32, #tpu.memory_space<vmem>>, vector<8x32xf32>,
    %c8_i32_85 = arith.constant 8 : i32
    %c0_86 = arith.constant 0 : index
    %c0_87 = arith.constant 0 : index
    %c0_88 = arith.constant 0 : index
    %310 = vector.load %arg15[%c0_86, %c0_87, %c0_88] : memref<2x8x32xf32, #tpu.memory_space<vmem>>, vector<1x8x32xf32>
    %311 = vector.shape_cast %310 : vector<1x8x32xf32> to vector<8x32xf32>
    %312 = vector.shape_cast %307 : vector<8x32xf32> to vector<1x8x32xf32>
    tpu.vector_store %arg15[%c0_86, %c0_87, %c0_88], %312 {strides = array<i32>} : memref<2x8x32xf32, #tpu.memory_space<vmem>>, vector<1x8x32xf32>,
    %c0_89 = arith.constant 0 : index
    %c0_90 = arith.constant 0 : index
    %313 = vector.load %arg16[%c0_89, %c0_90] : memref<64x32xf32, #tpu.memory_space<vmem>>, vector<64x32xf32>
    %c1 = arith.constant 1 : index
    %c0_91 = arith.constant 0 : index
    %c0_92 = arith.constant 0 : index
    %314 = vector.load %arg5[%c1, %c0_91, %c0_92] : memref<2x32x96xf32, #tpu.memory_space<vmem>>, vector<1x32x96xf32>
    %315 = vector.shape_cast %314 : vector<1x32x96xf32> to vector<32x96xf32>
    %cst_93 = arith.constant dense<0.000000e+00> : vector<64x96xf32>
    %316 = tpu.matmul %313, %315, %cst_93 {dimension_numbers = #tpu.dot_dimension_numbers<[1], [0], [0], [1], [0, 0, 1, 1], [], []>} : vector<64x32xf32>, vector<32x96xf32>, vector<64x96xf32> -> vector<64x96xf32>
    %c1_94 = arith.constant 1 : index
    %c0_95 = arith.constant 0 : index
    %c0_96 = arith.constant 0 : index
    %317 = vector.load %arg7[%c1_94, %c0_95, %c0_96] : memref<2x1x96xf32, #tpu.memory_space<vmem>>, vector<1x1x96xf32>
    %318 = vector.shape_cast %317 : vector<1x1x96xf32> to vector<1x96xf32>
    %319 = vector.broadcast %318 : vector<1x96xf32> to vector<64x96xf32>
    %320 = arith.addf %316, %319 : vector<64x96xf32>
    %c0_97 = arith.constant 0 : index
    %c0_98 = arith.constant 0 : index
    %321 = vector.load %arg17[%c0_97, %c0_98] : memref<64x96xf32, #tpu.memory_space<vmem>>, vector<64x96xf32>
    tpu.vector_store %arg17[%c0_97, %c0_98], %320 {strides = array<i32>} : memref<64x96xf32, #tpu.memory_space<vmem>>, vector<64x96xf32>,
    %c1_99 = arith.constant 1 : index
    %c0_100 = arith.constant 0 : index
    %c0_101 = arith.constant 0 : index
    %322 = vector.load %arg6[%c1_99, %c0_100, %c0_101] : memref<2x32x96xf32, #tpu.memory_space<vmem>>, vector<1x32x96xf32>
    %323 = vector.shape_cast %322 : vector<1x32x96xf32> to vector<32x96xf32>
    %c1_102 = arith.constant 1 : index
    %c0_103 = arith.constant 0 : index
    %c0_104 = arith.constant 0 : index
    %324 = vector.load %arg8[%c1_102, %c0_103, %c0_104] : memref<2x1x96xf32, #tpu.memory_space<vmem>>, vector<1x1x96xf32>
    %325 = vector.shape_cast %324 : vector<1x1x96xf32> to vector<1x96xf32>
    %c1_105 = arith.constant 1 : index
    %c0_106 = arith.constant 0 : index
    %c0_107 = arith.constant 0 : index
    %326 = vector.load %arg15[%c1_105, %c0_106, %c0_107] : memref<2x8x32xf32, #tpu.memory_space<vmem>>, vector<1x8x32xf32>
    %327 = vector.shape_cast %326 : vector<1x8x32xf32> to vector<8x32xf32>
    %c0_i32_108 = arith.constant 0 : i32
    %c8_i32_109 = arith.constant 8 : i32
    %328 = arith.muli %c0_i32_108, %c8_i32_109 : i32
    %329 = tpu.assume_multiple %328, 8 : i32
    %330 = arith.index_cast %329 : i32 to index
    %c0_110 = arith.constant 0 : index
    %331 = vector.load %arg17[%330, %c0_110] : memref<64x96xf32, #tpu.memory_space<vmem>>, vector<8x96xf32>
    %cst_111 = arith.constant dense<0.000000e+00> : vector<8x96xf32>
    %332 = tpu.matmul %327, %323, %cst_111 {dimension_numbers = #tpu.dot_dimension_numbers<[1], [0], [0], [1], [0, 0, 1, 1], [], []>} : vector<8x32xf32>, vector<32x96xf32>, vector<8x96xf32> -> vector<8x96xf32>
    %333 = vector.broadcast %325 : vector<1x96xf32> to vector<8x96xf32>
    %334 = arith.addf %332, %333 : vector<8x96xf32>
    %335 = vector.extract_strided_slice %331 {offsets = [0, 0], sizes = [8, 32], strides = [1, 1]} : vector<8x96xf32> to vector<8x32xf32>
    %336 = vector.extract_strided_slice %334 {offsets = [0, 0], sizes = [8, 32], strides = [1, 1]} : vector<8x96xf32> to vector<8x32xf32>
    %337 = arith.addf %335, %336 : vector<8x32xf32>
    %338 = arith.negf %337 : vector<8x32xf32>
    %339 = math.exp %338 : vector<8x32xf32>
    %cst_112 = arith.constant 1.000000e+00 : f32
    %340 = vector.broadcast %cst_112 : f32 to vector<8x32xf32>
    %341 = arith.addf %340, %339 : vector<8x32xf32>
    %342 = arith.divf %340, %341 : vector<8x32xf32>
    %343 = vector.extract_strided_slice %331 {offsets = [0, 32], sizes = [8, 32], strides = [1, 1]} : vector<8x96xf32> to vector<8x32xf32>
    %344 = vector.extract_strided_slice %334 {offsets = [0, 32], sizes = [8, 32], strides = [1, 1]} : vector<8x96xf32> to vector<8x32xf32>
    %345 = arith.addf %343, %344 : vector<8x32xf32>
    %346 = arith.negf %345 : vector<8x32xf32>
    %347 = math.exp %346 : vector<8x32xf32>
    %cst_113 = arith.constant 1.000000e+00 : f32
    %348 = vector.broadcast %cst_113 : f32 to vector<8x32xf32>
    %349 = arith.addf %348, %347 : vector<8x32xf32>
    %350 = arith.divf %348, %349 : vector<8x32xf32>
    %351 = vector.extract_strided_slice %331 {offsets = [0, 64], sizes = [8, 32], strides = [1, 1]} : vector<8x96xf32> to vector<8x32xf32>
    %352 = vector.extract_strided_slice %334 {offsets = [0, 64], sizes = [8, 32], strides = [1, 1]} : vector<8x96xf32> to vector<8x32xf32>
    %353 = arith.mulf %342, %352 : vector<8x32xf32>
    %354 = arith.addf %351, %353 : vector<8x32xf32>
    %355 = math.tanh %354 : vector<8x32xf32>
    %cst_114 = arith.constant 1.000000e+00 : f32
    %356 = vector.broadcast %cst_114 : f32 to vector<8x32xf32>
    %357 = arith.subf %356, %350 : vector<8x32xf32>
    %358 = arith.mulf %357, %355 : vector<8x32xf32>
    %359 = arith.mulf %350, %327 : vector<8x32xf32>
    %360 = arith.addf %358, %359 : vector<8x32xf32>
    %361 = arith.index_cast %329 : i32 to index
    %c0_115 = arith.constant 0 : index
    %362 = vector.load %arg16[%361, %c0_115] : memref<64x32xf32, #tpu.memory_space<vmem>>, vector<8x32xf32>
    tpu.vector_store %arg16[%361, %c0_115], %360 {strides = array<i32>} : memref<64x32xf32, #tpu.memory_space<vmem>>, vector<8x32xf32>,
    %c1_i32_116 = arith.constant 1 : i32
    %c8_i32_117 = arith.constant 8 : i32
    %363 = arith.muli %c1_i32_116, %c8_i32_117 : i32
    %364 = tpu.assume_multiple %363, 8 : i32
    %365 = arith.index_cast %364 : i32 to index
    %c0_118 = arith.constant 0 : index
    %366 = vector.load %arg17[%365, %c0_118] : memref<64x96xf32, #tpu.memory_space<vmem>>, vector<8x96xf32>
    %cst_119 = arith.constant dense<0.000000e+00> : vector<8x96xf32>
    %367 = tpu.matmul %360, %323, %cst_119 {dimension_numbers = #tpu.dot_dimension_numbers<[1], [0], [0], [1], [0, 0, 1, 1], [], []>} : vector<8x32xf32>, vector<32x96xf32>, vector<8x96xf32> -> vector<8x96xf32>
    %368 = vector.broadcast %325 : vector<1x96xf32> to vector<8x96xf32>
    %369 = arith.addf %367, %368 : vector<8x96xf32>
    %370 = vector.extract_strided_slice %366 {offsets = [0, 0], sizes = [8, 32], strides = [1, 1]} : vector<8x96xf32> to vector<8x32xf32>
    %371 = vector.extract_strided_slice %369 {offsets = [0, 0], sizes = [8, 32], strides = [1, 1]} : vector<8x96xf32> to vector<8x32xf32>
    %372 = arith.addf %370, %371 : vector<8x32xf32>
    %373 = arith.negf %372 : vector<8x32xf32>
    %374 = math.exp %373 : vector<8x32xf32>
    %cst_120 = arith.constant 1.000000e+00 : f32
    %375 = vector.broadcast %cst_120 : f32 to vector<8x32xf32>
    %376 = arith.addf %375, %374 : vector<8x32xf32>
    %377 = arith.divf %375, %376 : vector<8x32xf32>
    %378 = vector.extract_strided_slice %366 {offsets = [0, 32], sizes = [8, 32], strides = [1, 1]} : vector<8x96xf32> to vector<8x32xf32>
    %379 = vector.extract_strided_slice %369 {offsets = [0, 32], sizes = [8, 32], strides = [1, 1]} : vector<8x96xf32> to vector<8x32xf32>
    %380 = arith.addf %378, %379 : vector<8x32xf32>
    %381 = arith.negf %380 : vector<8x32xf32>
    %382 = math.exp %381 : vector<8x32xf32>
    %cst_121 = arith.constant 1.000000e+00 : f32
    %383 = vector.broadcast %cst_121 : f32 to vector<8x32xf32>
    %384 = arith.addf %383, %382 : vector<8x32xf32>
    %385 = arith.divf %383, %384 : vector<8x32xf32>
    %386 = vector.extract_strided_slice %366 {offsets = [0, 64], sizes = [8, 32], strides = [1, 1]} : vector<8x96xf32> to vector<8x32xf32>
    %387 = vector.extract_strided_slice %369 {offsets = [0, 64], sizes = [8, 32], strides = [1, 1]} : vector<8x96xf32> to vector<8x32xf32>
    %388 = arith.mulf %377, %387 : vector<8x32xf32>
    %389 = arith.addf %386, %388 : vector<8x32xf32>
    %390 = math.tanh %389 : vector<8x32xf32>
    %cst_122 = arith.constant 1.000000e+00 : f32
    %391 = vector.broadcast %cst_122 : f32 to vector<8x32xf32>
    %392 = arith.subf %391, %385 : vector<8x32xf32>
    %393 = arith.mulf %392, %390 : vector<8x32xf32>
    %394 = arith.mulf %385, %360 : vector<8x32xf32>
    %395 = arith.addf %393, %394 : vector<8x32xf32>
    %396 = arith.index_cast %364 : i32 to index
    %c0_123 = arith.constant 0 : index
    %397 = vector.load %arg16[%396, %c0_123] : memref<64x32xf32, #tpu.memory_space<vmem>>, vector<8x32xf32>
    tpu.vector_store %arg16[%396, %c0_123], %395 {strides = array<i32>} : memref<64x32xf32, #tpu.memory_space<vmem>>, vector<8x32xf32>,
    %c2_i32_124 = arith.constant 2 : i32
    %c8_i32_125 = arith.constant 8 : i32
    %398 = arith.muli %c2_i32_124, %c8_i32_125 : i32
    %399 = tpu.assume_multiple %398, 8 : i32
    %400 = arith.index_cast %399 : i32 to index
    %c0_126 = arith.constant 0 : index
    %401 = vector.load %arg17[%400, %c0_126] : memref<64x96xf32, #tpu.memory_space<vmem>>, vector<8x96xf32>
    %cst_127 = arith.constant dense<0.000000e+00> : vector<8x96xf32>
    %402 = tpu.matmul %395, %323, %cst_127 {dimension_numbers = #tpu.dot_dimension_numbers<[1], [0], [0], [1], [0, 0, 1, 1], [], []>} : vector<8x32xf32>, vector<32x96xf32>, vector<8x96xf32> -> vector<8x96xf32>
    %403 = vector.broadcast %325 : vector<1x96xf32> to vector<8x96xf32>
    %404 = arith.addf %402, %403 : vector<8x96xf32>
    %405 = vector.extract_strided_slice %401 {offsets = [0, 0], sizes = [8, 32], strides = [1, 1]} : vector<8x96xf32> to vector<8x32xf32>
    %406 = vector.extract_strided_slice %404 {offsets = [0, 0], sizes = [8, 32], strides = [1, 1]} : vector<8x96xf32> to vector<8x32xf32>
    %407 = arith.addf %405, %406 : vector<8x32xf32>
    %408 = arith.negf %407 : vector<8x32xf32>
    %409 = math.exp %408 : vector<8x32xf32>
    %cst_128 = arith.constant 1.000000e+00 : f32
    %410 = vector.broadcast %cst_128 : f32 to vector<8x32xf32>
    %411 = arith.addf %410, %409 : vector<8x32xf32>
    %412 = arith.divf %410, %411 : vector<8x32xf32>
    %413 = vector.extract_strided_slice %401 {offsets = [0, 32], sizes = [8, 32], strides = [1, 1]} : vector<8x96xf32> to vector<8x32xf32>
    %414 = vector.extract_strided_slice %404 {offsets = [0, 32], sizes = [8, 32], strides = [1, 1]} : vector<8x96xf32> to vector<8x32xf32>
    %415 = arith.addf %413, %414 : vector<8x32xf32>
    %416 = arith.negf %415 : vector<8x32xf32>
    %417 = math.exp %416 : vector<8x32xf32>
    %cst_129 = arith.constant 1.000000e+00 : f32
    %418 = vector.broadcast %cst_129 : f32 to vector<8x32xf32>
    %419 = arith.addf %418, %417 : vector<8x32xf32>
    %420 = arith.divf %418, %419 : vector<8x32xf32>
    %421 = vector.extract_strided_slice %401 {offsets = [0, 64], sizes = [8, 32], strides = [1, 1]} : vector<8x96xf32> to vector<8x32xf32>
    %422 = vector.extract_strided_slice %404 {offsets = [0, 64], sizes = [8, 32], strides = [1, 1]} : vector<8x96xf32> to vector<8x32xf32>
    %423 = arith.mulf %412, %422 : vector<8x32xf32>
    %424 = arith.addf %421, %423 : vector<8x32xf32>
    %425 = math.tanh %424 : vector<8x32xf32>
    %cst_130 = arith.constant 1.000000e+00 : f32
    %426 = vector.broadcast %cst_130 : f32 to vector<8x32xf32>
    %427 = arith.subf %426, %420 : vector<8x32xf32>
    %428 = arith.mulf %427, %425 : vector<8x32xf32>
    %429 = arith.mulf %420, %395 : vector<8x32xf32>
    %430 = arith.addf %428, %429 : vector<8x32xf32>
    %431 = arith.index_cast %399 : i32 to index
    %c0_131 = arith.constant 0 : index
    %432 = vector.load %arg16[%431, %c0_131] : memref<64x32xf32, #tpu.memory_space<vmem>>, vector<8x32xf32>
    tpu.vector_store %arg16[%431, %c0_131], %430 {strides = array<i32>} : memref<64x32xf32, #tpu.memory_space<vmem>>, vector<8x32xf32>,
    %c3_i32_132 = arith.constant 3 : i32
    %c8_i32_133 = arith.constant 8 : i32
    %433 = arith.muli %c3_i32_132, %c8_i32_133 : i32
    %434 = tpu.assume_multiple %433, 8 : i32
    %435 = arith.index_cast %434 : i32 to index
    %c0_134 = arith.constant 0 : index
    %436 = vector.load %arg17[%435, %c0_134] : memref<64x96xf32, #tpu.memory_space<vmem>>, vector<8x96xf32>
    %cst_135 = arith.constant dense<0.000000e+00> : vector<8x96xf32>
    %437 = tpu.matmul %430, %323, %cst_135 {dimension_numbers = #tpu.dot_dimension_numbers<[1], [0], [0], [1], [0, 0, 1, 1], [], []>} : vector<8x32xf32>, vector<32x96xf32>, vector<8x96xf32> -> vector<8x96xf32>
    %438 = vector.broadcast %325 : vector<1x96xf32> to vector<8x96xf32>
    %439 = arith.addf %437, %438 : vector<8x96xf32>
    %440 = vector.extract_strided_slice %436 {offsets = [0, 0], sizes = [8, 32], strides = [1, 1]} : vector<8x96xf32> to vector<8x32xf32>
    %441 = vector.extract_strided_slice %439 {offsets = [0, 0], sizes = [8, 32], strides = [1, 1]} : vector<8x96xf32> to vector<8x32xf32>
    %442 = arith.addf %440, %441 : vector<8x32xf32>
    %443 = arith.negf %442 : vector<8x32xf32>
    %444 = math.exp %443 : vector<8x32xf32>
    %cst_136 = arith.constant 1.000000e+00 : f32
    %445 = vector.broadcast %cst_136 : f32 to vector<8x32xf32>
    %446 = arith.addf %445, %444 : vector<8x32xf32>
    %447 = arith.divf %445, %446 : vector<8x32xf32>
    %448 = vector.extract_strided_slice %436 {offsets = [0, 32], sizes = [8, 32], strides = [1, 1]} : vector<8x96xf32> to vector<8x32xf32>
    %449 = vector.extract_strided_slice %439 {offsets = [0, 32], sizes = [8, 32], strides = [1, 1]} : vector<8x96xf32> to vector<8x32xf32>
    %450 = arith.addf %448, %449 : vector<8x32xf32>
    %451 = arith.negf %450 : vector<8x32xf32>
    %452 = math.exp %451 : vector<8x32xf32>
    %cst_137 = arith.constant 1.000000e+00 : f32
    %453 = vector.broadcast %cst_137 : f32 to vector<8x32xf32>
    %454 = arith.addf %453, %452 : vector<8x32xf32>
    %455 = arith.divf %453, %454 : vector<8x32xf32>
    %456 = vector.extract_strided_slice %436 {offsets = [0, 64], sizes = [8, 32], strides = [1, 1]} : vector<8x96xf32> to vector<8x32xf32>
    %457 = vector.extract_strided_slice %439 {offsets = [0, 64], sizes = [8, 32], strides = [1, 1]} : vector<8x96xf32> to vector<8x32xf32>
    %458 = arith.mulf %447, %457 : vector<8x32xf32>
    %459 = arith.addf %456, %458 : vector<8x32xf32>
    %460 = math.tanh %459 : vector<8x32xf32>
    %cst_138 = arith.constant 1.000000e+00 : f32
    %461 = vector.broadcast %cst_138 : f32 to vector<8x32xf32>
    %462 = arith.subf %461, %455 : vector<8x32xf32>
    %463 = arith.mulf %462, %460 : vector<8x32xf32>
    %464 = arith.mulf %455, %430 : vector<8x32xf32>
    %465 = arith.addf %463, %464 : vector<8x32xf32>
    %466 = arith.index_cast %434 : i32 to index
    %c0_139 = arith.constant 0 : index
    %467 = vector.load %arg16[%466, %c0_139] : memref<64x32xf32, #tpu.memory_space<vmem>>, vector<8x32xf32>
    tpu.vector_store %arg16[%466, %c0_139], %465 {strides = array<i32>} : memref<64x32xf32, #tpu.memory_space<vmem>>, vector<8x32xf32>,
    %c4_i32_140 = arith.constant 4 : i32
    %c8_i32_141 = arith.constant 8 : i32
    %468 = arith.muli %c4_i32_140, %c8_i32_141 : i32
    %469 = tpu.assume_multiple %468, 8 : i32
    %470 = arith.index_cast %469 : i32 to index
    %c0_142 = arith.constant 0 : index
    %471 = vector.load %arg17[%470, %c0_142] : memref<64x96xf32, #tpu.memory_space<vmem>>, vector<8x96xf32>
    %cst_143 = arith.constant dense<0.000000e+00> : vector<8x96xf32>
    %472 = tpu.matmul %465, %323, %cst_143 {dimension_numbers = #tpu.dot_dimension_numbers<[1], [0], [0], [1], [0, 0, 1, 1], [], []>} : vector<8x32xf32>, vector<32x96xf32>, vector<8x96xf32> -> vector<8x96xf32>
    %473 = vector.broadcast %325 : vector<1x96xf32> to vector<8x96xf32>
    %474 = arith.addf %472, %473 : vector<8x96xf32>
    %475 = vector.extract_strided_slice %471 {offsets = [0, 0], sizes = [8, 32], strides = [1, 1]} : vector<8x96xf32> to vector<8x32xf32>
    %476 = vector.extract_strided_slice %474 {offsets = [0, 0], sizes = [8, 32], strides = [1, 1]} : vector<8x96xf32> to vector<8x32xf32>
    %477 = arith.addf %475, %476 : vector<8x32xf32>
    %478 = arith.negf %477 : vector<8x32xf32>
    %479 = math.exp %478 : vector<8x32xf32>
    %cst_144 = arith.constant 1.000000e+00 : f32
    %480 = vector.broadcast %cst_144 : f32 to vector<8x32xf32>
    %481 = arith.addf %480, %479 : vector<8x32xf32>
    %482 = arith.divf %480, %481 : vector<8x32xf32>
    %483 = vector.extract_strided_slice %471 {offsets = [0, 32], sizes = [8, 32], strides = [1, 1]} : vector<8x96xf32> to vector<8x32xf32>
    %484 = vector.extract_strided_slice %474 {offsets = [0, 32], sizes = [8, 32], strides = [1, 1]} : vector<8x96xf32> to vector<8x32xf32>
    %485 = arith.addf %483, %484 : vector<8x32xf32>
    %486 = arith.negf %485 : vector<8x32xf32>
    %487 = math.exp %486 : vector<8x32xf32>
    %cst_145 = arith.constant 1.000000e+00 : f32
    %488 = vector.broadcast %cst_145 : f32 to vector<8x32xf32>
    %489 = arith.addf %488, %487 : vector<8x32xf32>
    %490 = arith.divf %488, %489 : vector<8x32xf32>
    %491 = vector.extract_strided_slice %471 {offsets = [0, 64], sizes = [8, 32], strides = [1, 1]} : vector<8x96xf32> to vector<8x32xf32>
    %492 = vector.extract_strided_slice %474 {offsets = [0, 64], sizes = [8, 32], strides = [1, 1]} : vector<8x96xf32> to vector<8x32xf32>
    %493 = arith.mulf %482, %492 : vector<8x32xf32>
    %494 = arith.addf %491, %493 : vector<8x32xf32>
    %495 = math.tanh %494 : vector<8x32xf32>
    %cst_146 = arith.constant 1.000000e+00 : f32
    %496 = vector.broadcast %cst_146 : f32 to vector<8x32xf32>
    %497 = arith.subf %496, %490 : vector<8x32xf32>
    %498 = arith.mulf %497, %495 : vector<8x32xf32>
    %499 = arith.mulf %490, %465 : vector<8x32xf32>
    %500 = arith.addf %498, %499 : vector<8x32xf32>
    %501 = arith.index_cast %469 : i32 to index
    %c0_147 = arith.constant 0 : index
    %502 = vector.load %arg16[%501, %c0_147] : memref<64x32xf32, #tpu.memory_space<vmem>>, vector<8x32xf32>
    tpu.vector_store %arg16[%501, %c0_147], %500 {strides = array<i32>} : memref<64x32xf32, #tpu.memory_space<vmem>>, vector<8x32xf32>,
    %c5_i32_148 = arith.constant 5 : i32
    %c8_i32_149 = arith.constant 8 : i32
    %503 = arith.muli %c5_i32_148, %c8_i32_149 : i32
    %504 = tpu.assume_multiple %503, 8 : i32
    %505 = arith.index_cast %504 : i32 to index
    %c0_150 = arith.constant 0 : index
    %506 = vector.load %arg17[%505, %c0_150] : memref<64x96xf32, #tpu.memory_space<vmem>>, vector<8x96xf32>
    %cst_151 = arith.constant dense<0.000000e+00> : vector<8x96xf32>
    %507 = tpu.matmul %500, %323, %cst_151 {dimension_numbers = #tpu.dot_dimension_numbers<[1], [0], [0], [1], [0, 0, 1, 1], [], []>} : vector<8x32xf32>, vector<32x96xf32>, vector<8x96xf32> -> vector<8x96xf32>
    %508 = vector.broadcast %325 : vector<1x96xf32> to vector<8x96xf32>
    %509 = arith.addf %507, %508 : vector<8x96xf32>
    %510 = vector.extract_strided_slice %506 {offsets = [0, 0], sizes = [8, 32], strides = [1, 1]} : vector<8x96xf32> to vector<8x32xf32>
    %511 = vector.extract_strided_slice %509 {offsets = [0, 0], sizes = [8, 32], strides = [1, 1]} : vector<8x96xf32> to vector<8x32xf32>
    %512 = arith.addf %510, %511 : vector<8x32xf32>
    %513 = arith.negf %512 : vector<8x32xf32>
    %514 = math.exp %513 : vector<8x32xf32>
    %cst_152 = arith.constant 1.000000e+00 : f32
    %515 = vector.broadcast %cst_152 : f32 to vector<8x32xf32>
    %516 = arith.addf %515, %514 : vector<8x32xf32>
    %517 = arith.divf %515, %516 : vector<8x32xf32>
    %518 = vector.extract_strided_slice %506 {offsets = [0, 32], sizes = [8, 32], strides = [1, 1]} : vector<8x96xf32> to vector<8x32xf32>
    %519 = vector.extract_strided_slice %509 {offsets = [0, 32], sizes = [8, 32], strides = [1, 1]} : vector<8x96xf32> to vector<8x32xf32>
    %520 = arith.addf %518, %519 : vector<8x32xf32>
    %521 = arith.negf %520 : vector<8x32xf32>
    %522 = math.exp %521 : vector<8x32xf32>
    %cst_153 = arith.constant 1.000000e+00 : f32
    %523 = vector.broadcast %cst_153 : f32 to vector<8x32xf32>
    %524 = arith.addf %523, %522 : vector<8x32xf32>
    %525 = arith.divf %523, %524 : vector<8x32xf32>
    %526 = vector.extract_strided_slice %506 {offsets = [0, 64], sizes = [8, 32], strides = [1, 1]} : vector<8x96xf32> to vector<8x32xf32>
    %527 = vector.extract_strided_slice %509 {offsets = [0, 64], sizes = [8, 32], strides = [1, 1]} : vector<8x96xf32> to vector<8x32xf32>
    %528 = arith.mulf %517, %527 : vector<8x32xf32>
    %529 = arith.addf %526, %528 : vector<8x32xf32>
    %530 = math.tanh %529 : vector<8x32xf32>
    %cst_154 = arith.constant 1.000000e+00 : f32
    %531 = vector.broadcast %cst_154 : f32 to vector<8x32xf32>
    %532 = arith.subf %531, %525 : vector<8x32xf32>
    %533 = arith.mulf %532, %530 : vector<8x32xf32>
    %534 = arith.mulf %525, %500 : vector<8x32xf32>
    %535 = arith.addf %533, %534 : vector<8x32xf32>
    %536 = arith.index_cast %504 : i32 to index
    %c0_155 = arith.constant 0 : index
    %537 = vector.load %arg16[%536, %c0_155] : memref<64x32xf32, #tpu.memory_space<vmem>>, vector<8x32xf32>
    tpu.vector_store %arg16[%536, %c0_155], %535 {strides = array<i32>} : memref<64x32xf32, #tpu.memory_space<vmem>>, vector<8x32xf32>,
    %c6_i32_156 = arith.constant 6 : i32
    %c8_i32_157 = arith.constant 8 : i32
    %538 = arith.muli %c6_i32_156, %c8_i32_157 : i32
    %539 = tpu.assume_multiple %538, 8 : i32
    %540 = arith.index_cast %539 : i32 to index
    %c0_158 = arith.constant 0 : index
    %541 = vector.load %arg17[%540, %c0_158] : memref<64x96xf32, #tpu.memory_space<vmem>>, vector<8x96xf32>
    %cst_159 = arith.constant dense<0.000000e+00> : vector<8x96xf32>
    %542 = tpu.matmul %535, %323, %cst_159 {dimension_numbers = #tpu.dot_dimension_numbers<[1], [0], [0], [1], [0, 0, 1, 1], [], []>} : vector<8x32xf32>, vector<32x96xf32>, vector<8x96xf32> -> vector<8x96xf32>
    %543 = vector.broadcast %325 : vector<1x96xf32> to vector<8x96xf32>
    %544 = arith.addf %542, %543 : vector<8x96xf32>
    %545 = vector.extract_strided_slice %541 {offsets = [0, 0], sizes = [8, 32], strides = [1, 1]} : vector<8x96xf32> to vector<8x32xf32>
    %546 = vector.extract_strided_slice %544 {offsets = [0, 0], sizes = [8, 32], strides = [1, 1]} : vector<8x96xf32> to vector<8x32xf32>
    %547 = arith.addf %545, %546 : vector<8x32xf32>
    %548 = arith.negf %547 : vector<8x32xf32>
    %549 = math.exp %548 : vector<8x32xf32>
    %cst_160 = arith.constant 1.000000e+00 : f32
    %550 = vector.broadcast %cst_160 : f32 to vector<8x32xf32>
    %551 = arith.addf %550, %549 : vector<8x32xf32>
    %552 = arith.divf %550, %551 : vector<8x32xf32>
    %553 = vector.extract_strided_slice %541 {offsets = [0, 32], sizes = [8, 32], strides = [1, 1]} : vector<8x96xf32> to vector<8x32xf32>
    %554 = vector.extract_strided_slice %544 {offsets = [0, 32], sizes = [8, 32], strides = [1, 1]} : vector<8x96xf32> to vector<8x32xf32>
    %555 = arith.addf %553, %554 : vector<8x32xf32>
    %556 = arith.negf %555 : vector<8x32xf32>
    %557 = math.exp %556 : vector<8x32xf32>
    %cst_161 = arith.constant 1.000000e+00 : f32
    %558 = vector.broadcast %cst_161 : f32 to vector<8x32xf32>
    %559 = arith.addf %558, %557 : vector<8x32xf32>
    %560 = arith.divf %558, %559 : vector<8x32xf32>
    %561 = vector.extract_strided_slice %541 {offsets = [0, 64], sizes = [8, 32], strides = [1, 1]} : vector<8x96xf32> to vector<8x32xf32>
    %562 = vector.extract_strided_slice %544 {offsets = [0, 64], sizes = [8, 32], strides = [1, 1]} : vector<8x96xf32> to vector<8x32xf32>
    %563 = arith.mulf %552, %562 : vector<8x32xf32>
    %564 = arith.addf %561, %563 : vector<8x32xf32>
    %565 = math.tanh %564 : vector<8x32xf32>
    %cst_162 = arith.constant 1.000000e+00 : f32
    %566 = vector.broadcast %cst_162 : f32 to vector<8x32xf32>
    %567 = arith.subf %566, %560 : vector<8x32xf32>
    %568 = arith.mulf %567, %565 : vector<8x32xf32>
    %569 = arith.mulf %560, %535 : vector<8x32xf32>
    %570 = arith.addf %568, %569 : vector<8x32xf32>
    %571 = arith.index_cast %539 : i32 to index
    %c0_163 = arith.constant 0 : index
    %572 = vector.load %arg16[%571, %c0_163] : memref<64x32xf32, #tpu.memory_space<vmem>>, vector<8x32xf32>
    tpu.vector_store %arg16[%571, %c0_163], %570 {strides = array<i32>} : memref<64x32xf32, #tpu.memory_space<vmem>>, vector<8x32xf32>,
    %c7_i32_164 = arith.constant 7 : i32
    %c8_i32_165 = arith.constant 8 : i32
    %573 = arith.muli %c7_i32_164, %c8_i32_165 : i32
    %574 = tpu.assume_multiple %573, 8 : i32
    %575 = arith.index_cast %574 : i32 to index
    %c0_166 = arith.constant 0 : index
    %576 = vector.load %arg17[%575, %c0_166] : memref<64x96xf32, #tpu.memory_space<vmem>>, vector<8x96xf32>
    %cst_167 = arith.constant dense<0.000000e+00> : vector<8x96xf32>
    %577 = tpu.matmul %570, %323, %cst_167 {dimension_numbers = #tpu.dot_dimension_numbers<[1], [0], [0], [1], [0, 0, 1, 1], [], []>} : vector<8x32xf32>, vector<32x96xf32>, vector<8x96xf32> -> vector<8x96xf32>
    %578 = vector.broadcast %325 : vector<1x96xf32> to vector<8x96xf32>
    %579 = arith.addf %577, %578 : vector<8x96xf32>
    %580 = vector.extract_strided_slice %576 {offsets = [0, 0], sizes = [8, 32], strides = [1, 1]} : vector<8x96xf32> to vector<8x32xf32>
    %581 = vector.extract_strided_slice %579 {offsets = [0, 0], sizes = [8, 32], strides = [1, 1]} : vector<8x96xf32> to vector<8x32xf32>
    %582 = arith.addf %580, %581 : vector<8x32xf32>
    %583 = arith.negf %582 : vector<8x32xf32>
    %584 = math.exp %583 : vector<8x32xf32>
    %cst_168 = arith.constant 1.000000e+00 : f32
    %585 = vector.broadcast %cst_168 : f32 to vector<8x32xf32>
    %586 = arith.addf %585, %584 : vector<8x32xf32>
    %587 = arith.divf %585, %586 : vector<8x32xf32>
    %588 = vector.extract_strided_slice %576 {offsets = [0, 32], sizes = [8, 32], strides = [1, 1]} : vector<8x96xf32> to vector<8x32xf32>
    %589 = vector.extract_strided_slice %579 {offsets = [0, 32], sizes = [8, 32], strides = [1, 1]} : vector<8x96xf32> to vector<8x32xf32>
    %590 = arith.addf %588, %589 : vector<8x32xf32>
    %591 = arith.negf %590 : vector<8x32xf32>
    %592 = math.exp %591 : vector<8x32xf32>
    %cst_169 = arith.constant 1.000000e+00 : f32
    %593 = vector.broadcast %cst_169 : f32 to vector<8x32xf32>
    %594 = arith.addf %593, %592 : vector<8x32xf32>
    %595 = arith.divf %593, %594 : vector<8x32xf32>
    %596 = vector.extract_strided_slice %576 {offsets = [0, 64], sizes = [8, 32], strides = [1, 1]} : vector<8x96xf32> to vector<8x32xf32>
    %597 = vector.extract_strided_slice %579 {offsets = [0, 64], sizes = [8, 32], strides = [1, 1]} : vector<8x96xf32> to vector<8x32xf32>
    %598 = arith.mulf %587, %597 : vector<8x32xf32>
    %599 = arith.addf %596, %598 : vector<8x32xf32>
    %600 = math.tanh %599 : vector<8x32xf32>
    %cst_170 = arith.constant 1.000000e+00 : f32
    %601 = vector.broadcast %cst_170 : f32 to vector<8x32xf32>
    %602 = arith.subf %601, %595 : vector<8x32xf32>
    %603 = arith.mulf %602, %600 : vector<8x32xf32>
    %604 = arith.mulf %595, %570 : vector<8x32xf32>
    %605 = arith.addf %603, %604 : vector<8x32xf32>
    %606 = arith.index_cast %574 : i32 to index
    %c0_171 = arith.constant 0 : index
    %607 = vector.load %arg16[%606, %c0_171] : memref<64x32xf32, #tpu.memory_space<vmem>>, vector<8x32xf32>
    tpu.vector_store %arg16[%606, %c0_171], %605 {strides = array<i32>} : memref<64x32xf32, #tpu.memory_space<vmem>>, vector<8x32xf32>,
    %c8_i32_172 = arith.constant 8 : i32
    %c1_173 = arith.constant 1 : index
    %c0_174 = arith.constant 0 : index
    %c0_175 = arith.constant 0 : index
    %608 = vector.load %arg15[%c1_173, %c0_174, %c0_175] : memref<2x8x32xf32, #tpu.memory_space<vmem>>, vector<1x8x32xf32>
    %609 = vector.shape_cast %608 : vector<1x8x32xf32> to vector<8x32xf32>
    %610 = vector.shape_cast %605 : vector<8x32xf32> to vector<1x8x32xf32>
    tpu.vector_store %arg15[%c1_173, %c0_174, %c0_175], %610 {strides = array<i32>} : memref<2x8x32xf32, #tpu.memory_space<vmem>>, vector<1x8x32xf32>,
    %c0_176 = arith.constant 0 : index
    %c0_177 = arith.constant 0 : index
    %611 = vector.load %arg16[%c0_176, %c0_177] : memref<64x32xf32, #tpu.memory_space<vmem>>, vector<64x32xf32>
    %c0_178 = arith.constant 0 : index
    %c0_179 = arith.constant 0 : index
    %612 = vector.load %arg9[%c0_178, %c0_179] : memref<32x32xf32, #tpu.memory_space<vmem>>, vector<32x32xf32>
    %cst_180 = arith.constant dense<0.000000e+00> : vector<64x32xf32>
    %613 = tpu.matmul %611, %612, %cst_180 {dimension_numbers = #tpu.dot_dimension_numbers<[1], [0], [0], [1], [0, 0, 1, 1], [], []>} : vector<64x32xf32>, vector<32x32xf32>, vector<64x32xf32> -> vector<64x32xf32>
    %c0_181 = arith.constant 0 : index
    %c0_182 = arith.constant 0 : index
    %614 = vector.load %arg10[%c0_181, %c0_182] : memref<1x32xf32, #tpu.memory_space<vmem>>, vector<1x32xf32>
    %615 = vector.broadcast %614 : vector<1x32xf32> to vector<64x32xf32>
    %616 = arith.addf %613, %615 : vector<64x32xf32>
    %617 = math.tanh %616 : vector<64x32xf32>
    %c0_183 = arith.constant 0 : index
    %c0_184 = arith.constant 0 : index
    %618 = vector.load %arg11[%c0_183, %c0_184] : memref<32x1xf32, #tpu.memory_space<vmem>>, vector<32x1xf32>
    %cst_185 = arith.constant dense<0.000000e+00> : vector<64x1xf32>
    %619 = tpu.matmul %617, %618, %cst_185 {dimension_numbers = #tpu.dot_dimension_numbers<[1], [0], [0], [1], [0, 0, 1, 1], [], []>} : vector<64x32xf32>, vector<32x1xf32>, vector<64x1xf32> -> vector<64x1xf32>
    %c0_186 = arith.constant 0 : index
    %c0_187 = arith.constant 0 : index
    %620 = vector.load %arg12[%c0_186, %c0_187] : memref<1x1xf32, #tpu.memory_space<vmem>>, vector<1x1xf32>
    %621 = vector.broadcast %620 : vector<1x1xf32> to vector<64x1xf32>
    %622 = arith.addf %619, %621 : vector<64x1xf32>
    %cst_188 = arith.constant 0.000000e+00 : f32
    %623 = vector.broadcast %cst_188 : f32 to vector<64x1xf32>
    %624 = arith.maximumf %622, %623 : vector<64x1xf32>
    %c0_189 = arith.constant 0 : index
    %c0_190 = arith.constant 0 : index
    %625 = vector.load %arg13[%c0_189, %c0_190] : memref<64x1xf32, #tpu.memory_space<vmem>>, vector<64x1xf32>
    tpu.vector_store %arg13[%c0_189, %c0_190], %624 {strides = array<i32>} : memref<64x1xf32, #tpu.memory_space<vmem>>, vector<64x1xf32>,
    %c0_i32_191 = arith.constant 0 : i32
    %626 = arith.cmpi eq, %arg0, %c0_i32_191 : i32
    %627 = arith.extui %626 : i1 to i32
    %c0_i32_192 = arith.constant 0 : i32
    %628 = arith.cmpi ne, %627, %c0_i32_192 : i32
    scf.if %628 {
      %c0_193 = arith.constant 0 : index
      %c0_194 = arith.constant 0 : index
      %c0_195 = arith.constant 0 : index
      %629 = vector.load %arg15[%c0_193, %c0_194, %c0_195] : memref<2x8x32xf32, #tpu.memory_space<vmem>>, vector<2x8x32xf32>
      %c0_196 = arith.constant 0 : index
      %c0_197 = arith.constant 0 : index
      %c0_198 = arith.constant 0 : index
      %630 = vector.load %arg14[%c0_196, %c0_197, %c0_198] : memref<2x8x32xf32, #tpu.memory_space<vmem>>, vector<2x8x32xf32>
      tpu.vector_store %arg14[%c0_196, %c0_197, %c0_198], %629 {strides = array<i32>} : memref<2x8x32xf32, #tpu.memory_space<vmem>>, vector<2x8x32xf32>,
    } else {
    }
    return
  }
  func.func @transform_0(%arg0: i32) -> (i32, i32) {
    %c0_i32 = arith.constant 0 : i32
    %c0_i32_0 = arith.constant 0 : i32
    return %arg0, %c0_i32 : i32, i32
  }
  func.func @transform_1(%arg0: i32) -> (i32, i32, i32) {
    %c0_i32 = arith.constant 0 : i32
    %c0_i32_0 = arith.constant 0 : i32
    %c0_i32_1 = arith.constant 0 : i32
    %c0_i32_2 = arith.constant 0 : i32
    return %c0_i32, %c0_i32_0, %c0_i32_1 : i32, i32, i32
  }
  func.func @transform_2(%arg0: i32) -> (i32, i32) {
    %c0_i32 = arith.constant 0 : i32
    %c0_i32_0 = arith.constant 0 : i32
    %c0_i32_1 = arith.constant 0 : i32
    return %c0_i32, %c0_i32_0 : i32, i32
  }
  func.func @transform_3(%arg0: i32) -> (i32, i32) {
    %c0_i32 = arith.constant 0 : i32
    %c0_i32_0 = arith.constant 0 : i32
    %c0_i32_1 = arith.constant 0 : i32
    return %c0_i32, %c0_i32_0 : i32, i32
  }
  func.func @transform_4(%arg0: i32) -> (i32, i32, i32) {
    %c0_i32 = arith.constant 0 : i32
    %c0_i32_0 = arith.constant 0 : i32
    %c0_i32_1 = arith.constant 0 : i32
    %c0_i32_2 = arith.constant 0 : i32
    return %c0_i32, %c0_i32_0, %c0_i32_1 : i32, i32, i32
  }
  func.func @transform_5(%arg0: i32) -> (i32, i32, i32) {
    %c0_i32 = arith.constant 0 : i32
    %c0_i32_0 = arith.constant 0 : i32
    %c0_i32_1 = arith.constant 0 : i32
    %c0_i32_2 = arith.constant 0 : i32
    return %c0_i32, %c0_i32_0, %c0_i32_1 : i32, i32, i32
  }
  func.func @transform_6(%arg0: i32) -> (i32, i32, i32) {
    %c0_i32 = arith.constant 0 : i32
    %c0_i32_0 = arith.constant 0 : i32
    %c0_i32_1 = arith.constant 0 : i32
    %c0_i32_2 = arith.constant 0 : i32
    return %c0_i32, %c0_i32_0, %c0_i32_1 : i32, i32, i32
  }
  func.func @transform_7(%arg0: i32) -> (i32, i32, i32) {
    %c0_i32 = arith.constant 0 : i32
    %c0_i32_0 = arith.constant 0 : i32
    %c0_i32_1 = arith.constant 0 : i32
    %c0_i32_2 = arith.constant 0 : i32
    return %c0_i32, %c0_i32_0, %c0_i32_1 : i32, i32, i32
  }
  func.func @transform_8(%arg0: i32) -> (i32, i32) {
    %c0_i32 = arith.constant 0 : i32
    %c0_i32_0 = arith.constant 0 : i32
    %c0_i32_1 = arith.constant 0 : i32
    return %c0_i32, %c0_i32_0 : i32, i32
  }
  func.func @transform_9(%arg0: i32) -> (i32, i32) {
    %c0_i32 = arith.constant 0 : i32
    %c0_i32_0 = arith.constant 0 : i32
    %c0_i32_1 = arith.constant 0 : i32
    return %c0_i32, %c0_i32_0 : i32, i32
  }
  func.func @transform_10(%arg0: i32) -> (i32, i32) {
    %c0_i32 = arith.constant 0 : i32
    %c0_i32_0 = arith.constant 0 : i32
    %c0_i32_1 = arith.constant 0 : i32
    return %c0_i32, %c0_i32_0 : i32, i32
  }
  func.func @transform_11(%arg0: i32) -> (i32, i32) {
    %c0_i32 = arith.constant 0 : i32
    %c0_i32_0 = arith.constant 0 : i32
    %c0_i32_1 = arith.constant 0 : i32
    return %c0_i32, %c0_i32_0 : i32, i32
  }
  func.func @transform_12(%arg0: i32) -> (i32, i32) {
    %c0_i32 = arith.constant 0 : i32
    %c0_i32_0 = arith.constant 0 : i32
    return %arg0, %c0_i32 : i32, i32
  }
  func.func @transform_13(%arg0: i32) -> (i32, i32, i32) {
    %c0_i32 = arith.constant 0 : i32
    %c0_i32_0 = arith.constant 0 : i32
    %c0_i32_1 = arith.constant 0 : i32
    %c0_i32_2 = arith.constant 0 : i32
    return %c0_i32, %c0_i32_0, %c0_i32_1 : i32, i32, i32
  }
}

</mosaic_0001>

<bundles_post_ra>
// kernel: tpu_custom_call.1
= control target key start
LH: loop header
LB: loop body
LE: loop exit
PB: predicated region body
PF: predicated region fallthrough
CT: control target
= control target key end

     0   :  { %s4244_s0 = inlined_call_operand.vmem [shape: f32[64,16], index: 0, kind: input, shape index: {}]   ;;  %s4245_s1 = inlined_call_operand.hbm [shape: f32[2,8,32], index: 1, kind: input, shape index: {}]   ;;  %s4246_s2 = inlined_call_operand.hbm [shape: f32[16,32], index: 2, kind: input, shape index: {}]   ;;  %s4247_s3 = inlined_call_operand.hbm [shape: f32[1,32], index: 3, kind: input, shape index: {}]   ;;  %s4248_s4 = inlined_call_operand.vmem [shape: f32[2,32,96], index: 4, kind: input, shape index: {}]   ;;  %s4249_s5 = inlined_call_operand.vmem [shape: f32[2,32,96], index: 5, kind: input, shape index: {}]   ;;  %s4250_s6 = inlined_call_operand.vmem [shape: f32[2,1,96], index: 6, kind: input, shape index: {}]   ;;  %s4251_s7 = inlined_call_operand.vmem [shape: f32[2,1,96], index: 7, kind: input, shape index: {}]   ;;  %s4252_s8 = inlined_call_operand.hbm [shape: f32[32,32], index: 8, kind: input, shape index: {}]   ;;  %s4253_s9 = inlined_call_operand.vmem [shape: f32[1,32], index: 9, kind: input, shape index: {}]   ;;  %s4254_s10 = inlined_call_operand.vmem [shape: f32[32,1], index: 10, kind: input, shape index: {}]   ;;  %s4255_s11 = inlined_call_operand.<no memory space> [shape: f32[1,1], index: 11, kind: input, shape index: {}]   ;;  %s4256_s12 = inlined_call_operand.vmem [shape: f32[64,1], index: 12, kind: output, shape index: {0}]   ;;  %s4257_s13 = inlined_call_operand.hbm [shape: f32[2,8,32], index: 13, kind: output, shape index: {1}]  }
   0x1   :  { %v19_v0 = vstv %s4255_s11 }
   0x2   :  { %20 = vst [vmem:[#allocation5] sm:$0x1] %v19_v0 }
   0x3   :  { %21 = vsyncpa [#allocation7], 0 }
   0x4   :  { %22 = vsyncpa [#allocation10], 0 }
   0x5   :  { %23 = vsyncpa [#allocation13], 0 }
   0x6   :  { %24 = vsyncpa [#allocation8], 0  ;;  %s3599_s27 = smov [#allocation9]   ;;  %s3600_s29 = smov [#allocation6]  }
   0x7   :  { %s44_s28 = sshll.u32 %s3599_s27, 4  ;;  %s32_s30 = sshll.u32 %s3600_s29, 4  ;;  %s45_s28 = int_to_ptr.vmem [resolvable:$true] %s44_s28  ;;  %s3685_s30 = int_to_ptr.vmem [resolvable:$true] %s32_s30 }
   0x8   :  { %s3481_s16 = scalar_lea.hbm %s4246_s2, 256 }
   0x9   :  { %p3482_p0 = scmp.ne.s32.totalorder %s4246_s2, %s3481_s16  ;;  %p3485_p1 = scmp.lt.u32.totalorder %s3481_s16, %s4246_s2 }
   0xb   :  { %p3487_p2 = pnand %p3485_p1, %p3482_p0 }
   0xd   :  { %3490 = shalt.err (!%p3487_p2)
}
   0xe   :  { %s3491_s20 = scalar_lea.vmem %s45_s28, 256  ;;  %p3496_p4 = scmp.lt.s32.totalorder %s45_s28, %s45_s28 }
   0xf   :  { %p3492_p3 = scmp.ne.s32.totalorder %s45_s28, %s3491_s20  ;;  %p3497_p5 = scmp.lt.s32.totalorder %s3491_s20, %s3491_s20 }
  0x11   :  { %p3498_p6 = por %p3497_p5, %p3496_p4 }
  0x13   :  { %p3499_p7 = pnand %p3498_p6, %p3492_p3 }
  0x15   :  { %3502 = shalt.err (!%p3499_p7)
}
  0x16   :  { %s3601_s21 = smov 128   ;;  %s3602_s22 = smov 8  }
  0x17   :  { %50 = dma.hbm_to_vmem [thread:$0]  %s4246_s2, 256, %s45_s28, [#allocation10], %s3601_s21, %s3601_s21, %s3602_s22  }
  0x18   :  { %s3503_s27 = scalar_lea.hbm %s4245_s1, 256 }
  0x19   :  { %p3504_p8 = scmp.ne.s32.totalorder %s4245_s1, %s3503_s27  ;;  %p3507_p9 = scmp.lt.u32.totalorder %s3503_s27, %s4245_s1 }
  0x1b   :  { %p3509_p10 = pnand %p3507_p9, %p3504_p8 }
  0x1d   :  { %3512 = shalt.err (!%p3509_p10)
}
  0x1e   :  { %s3513_s17 = scalar_lea.vmem %s3685_s30, 256  ;;  %p3518_p12 = scmp.lt.s32.totalorder %s3685_s30, %s3685_s30 }
  0x1f   :  { %p3514_p11 = scmp.ne.s32.totalorder %s3685_s30, %s3513_s17  ;;  %p3519_p13 = scmp.lt.s32.totalorder %s3513_s17, %s3513_s17 }
  0x21   :  { %p3520_p0 = por %p3519_p13, %p3518_p12 }
  0x23   :  { %p3521_p1 = pnand %p3520_p0, %p3514_p11 }
  0x25   :  { %3524 = shalt.err (!%p3521_p1)
}
  0x26   :  { %38 = dma.hbm_to_vmem [thread:$0]  %s4245_s1, 256, %s3685_s30, [#allocation7], %s3601_s21, %s3601_s21, %s3602_s22  }
  0x27   :  { %s3603_s18 = smov [#allocation11]   ;;  %s3604_s19 = smov [#allocation12]  }
  0x28   :  { %s57_s11 = sshll.u32 %s3603_s18, 4  ;;  %s74_s20 = sshll.u32 %s3604_s19, 4  ;;  %s58_s11 = int_to_ptr.vmem [resolvable:$true] %s57_s11  ;;  %s3722_s20 = int_to_ptr.vmem [resolvable:$true] %s74_s20 }
  0x29   :  { %s3525_s25 = scalar_lea.hbm %s4247_s3, 16 }
  0x2a   :  { %p3526_p2 = scmp.ne.s32.totalorder %s4247_s3, %s3525_s25  ;;  %p3529_p3 = scmp.lt.u32.totalorder %s3525_s25, %s4247_s3 }
  0x2c   :  { %p3531_p4 = pnand %p3529_p3, %p3526_p2 }
  0x2e   :  { %3534 = shalt.err (!%p3531_p4)
}
  0x2f   :  { %s3535_s1 = scalar_lea.vmem %s58_s11, 16  ;;  %s3539_s30 = scalar_lea.vmem %s58_s11, 32 }
  0x30   :  { %p3536_p5 = scmp.ne.s32.totalorder %s58_s11, %s3535_s1  ;;  %p3540_p6 = scmp.lt.s32.totalorder %s58_s11, %s58_s11 }
  0x31   :  { %p3541_p7 = scmp.lt.s32.totalorder %s3539_s30, %s3535_s1 }
  0x33   :  { %p3542_p8 = por %p3541_p7, %p3540_p6 }
  0x35   :  { %p3543_p9 = pnand %p3542_p8, %p3536_p5 }
  0x37   :  { %3546 = shalt.err (!%p3543_p9)
}
  0x38   :  { %60 = dma.hbm_to_vmem [thread:$0]  %s4247_s3, 16, %s58_s11, [#allocation10]  }
  0x39   :  { %s3547_s28 = scalar_lea.hbm %s4252_s8, 512 }
  0x3a   :  { %p3548_p10 = scmp.ne.s32.totalorder %s4252_s8, %s3547_s28  ;;  %p3551_p11 = scmp.lt.u32.totalorder %s3547_s28, %s4252_s8 }
  0x3c   :  { %p3553_p12 = pnand %p3551_p11, %p3548_p10 }
  0x3e   :  { %3556 = shalt.err (!%p3553_p12)
}
  0x3f   :  { %s3557_s25 = scalar_lea.vmem %s3722_s20, 512  ;;  %p3562_p0 = scmp.lt.s32.totalorder %s3722_s20, %s3722_s20 }
  0x40   :  { %p3558_p13 = scmp.ne.s32.totalorder %s3722_s20, %s3557_s25  ;;  %p3563_p1 = scmp.lt.s32.totalorder %s3557_s25, %s3557_s25 }
  0x42   :  { %p3564_p2 = por %p3563_p1, %p3562_p0 }
  0x44   :  { %p3565_p3 = pnand %p3564_p2, %p3558_p13 }
  0x46   :  { %3568 = shalt.err (!%p3565_p3)
}
  0x47   :  { %80 = dma.hbm_to_vmem [thread:$0]  %s4252_s8, 512, %s3722_s20, [#allocation13], %s3601_s21, %s3601_s21, %s3602_s22  }
  0x48   :  { %3591 = dma.done.wait [#allocation7], 256  }
  0x49   :  { %3592 = vsyncadd [#allocation7], 4294967040 }
  0x4a   :  { %3593 = dma.done.wait [#allocation10], 272  }
  0x4b   :  { %3594 = vsyncadd [#allocation10], 4294967024 }
  0x4c   :  { %3595 = dma.done.wait [#allocation13], 512  }
  0x4d   :  { %3596 = vsyncadd [#allocation13], 4294966784  ;;  %vm125_vm0 = vcmask 130048   ;;  %v116_v1 = vld [vmem:[#allocation9] sm:$0xff]  ;;  %v117_v2 = vld [vmem:[#allocation9 + $0x8] sm:$0xff]  ;;  %vm105_vm1 = vcmask 261120  }
  0x4e   :  { %v108_v3 = vld [vmem:[%s4244_s0] sm:$0xff]  ;;  %v3192_v4 = vpack.c.bf16 %v117_v2, %v116_v1  ;;  %v470_v6 = vld [vmem:[%s4249_s5 + $0x8] sm:$0xff]  ;;  %v103_v9 = vld [vmem:[#allocation6] sm:$0xff]  ;;  %v3605_v10 = vmov 0.0|0.0   ;;  %vm3606_vm2 = vmmov 0   ;;  %v3607_v20 = vmov 0.0  }
  0x4f   :  { %2924 = vmatprep.mubr.msk.f32.mxu0 %vm125_vm0, %v108_v3  ;;  %v469_v5 = vld [vmem:[%s4249_s5] sm:$0xff]  ;;  %v109_v7 = vld [vmem:[%s4244_s0 + $0x8] sm:$0xff]  ;;  %v110_v11 = vld [vmem:[%s4244_s0 + $0x10] sm:$0xff]  ;;  %106 = vst.msk [vmem:[#allocation2] sm:$0xff] %vm105_vm1, %v103_v9  ;;  %s3608_s18 = smov 64   ;;  %vm460_vm3 = vcmask 785408  }
  0x50   :  { %3193 = vmatprep.subr.bf16.mxu0 %v3192_v4  ;;  %v3769_v8 = vpack.c.bf16 %v470_v6, %v469_v5  ;;  %v471_v12 = vld [vmem:[%s4249_s5 + $0x10] sm:$0xff]  ;;  %v472_v13 = vld [vmem:[%s4249_s5 + $0x18] sm:$0xff]  ;;  %v112_v16 = vld [vmem:[%s4244_s0 + $0x20] sm:$0xff]  ;;  %s3609_s24 = smov 96   ;;  %s3610_s25 = smov 32   ;;  %vm2646_vm4 = vcmask 7168  }
  0x51   :  { %3195 = vmatpush3.bf16.msra.mxu0 %v3192_v4  ;;  %v111_v14 = vld [vmem:[%s4244_s0 + $0x18] sm:$0xff]  ;;  %v3788_v15 = vpack.c.bf16 %v472_v13, %v471_v12  ;;  %v113_v17 = vld [vmem:[%s4244_s0 + $0x28] sm:$0xff]  ;;  %v114_v18 = vld [vmem:[%s4244_s0 + $0x30] sm:$0xff] }
  0x52   :  { %3204 = vmatprep.subr.bf16.mxu0 %v3605_v10  ;;  %v115_v19 = vld [vmem:[%s4244_s0 + $0x38] sm:$0xff]  ;;  %v320_v22 = vld [vmem:[%s4248_s4] sm:$0xff]  ;;  %v321_v23 = vld [vmem:[%s4248_s4 + $0x8] sm:$0xff] }
  0x53   :  { %v3196_v24 = vpack.c.bf16 %v321_v23, %v320_v22  ;;  %v322_v25 = vld [vmem:[%s4248_s4 + $0x10] sm:$0xff]  ;;  %v323_v26 = vld [vmem:[%s4248_s4 + $0x18] sm:$0xff]  ;;  %v3838_v51 = vld [vmem:[%s4251_s7] ss:$0 sm:$0xff] }
  0x54   :  { %2925 = vmatmul.mubr.msk.f32.vlgmr.msra.gmra.mrb[0].mxu0 %vm125_vm0, %v109_v7  ;;  %v3200_v27 = vpack.c.bf16 %v323_v26, %v322_v25  ;;  %v2685_v28 = vld [vmem:[#allocation11] ss:$0 sm:$0xff] }
  0x55   :  { %2927 = vmatprep.mubr.msk.f32.mxu0 %vm125_vm0, %v110_v11  ;;  %3206 = vmatpush3.bf16.msra.mxu0 %v3769_v8 }
  0x56   :  { %3207 = vmatprep.subr.bf16.mxu0 %v3605_v10  ;;  %v3812_v21 = vld [vmem:[#allocation2] sm:$0xff]  ;;  %3197 = vmatprep.subr.bf16.mxu1 %v3196_v24 }
  0x57   :  { %3199 = vmatpush3.bf16.msra.mxu1 %v3196_v24 }
  0x58   :  { %2928 = vmatmul.mubr.msk.f32.gmra.mrb[2].mxu0 %vm125_vm0, %v111_v14  ;;  %3201 = vmatprep.subr.bf16.mxu1 %v3200_v27 }
  0x59   :  { %2930 = vmatprep.mubr.msk.f32.mxu0 %vm125_vm0, %v112_v16  ;;  %3209 = vmatpush3.bf16.msra.mxu0 %v3788_v15 }
  0x5a   :  { %3216 = vmatprep.subr.bf16.mxu0 %v3605_v10 }
  0x5b   :  { %3203 = vmatpush3.bf16.msra.mxu1 %v3200_v27 }
  0x5c   :  { %2931 = vmatmul.mubr.msk.f32.gmra.mrb[4].mxu0 %vm125_vm0, %v113_v17  ;;  %3210 = vmatprep.subr.bf16.mxu1 %v3605_v10 }
  0x5d   :  { %2933 = vmatprep.mubr.msk.f32.mxu0 %vm125_vm0, %v114_v18 }
  0x60   :  { %2934 = vmatmul.mubr.msk.f32.gmra.mrb[6].mxu0 %vm125_vm0, %v115_v19 }
  0x61   :  { %2964 = vmatprep.mubr.msk.f32.mxu0 %vm3606_vm2, %v3607_v20 }
  0x64   :  { %2965 = vmatmul.mubr.msk.f32.vlgmr.msra.gmra.mrb[8].mxu0 %vm105_vm1, %v3812_v21 }
  0x65   :  { %3218 = vmatpush3.bf16.msra.mxu0 %v3769_v8  ;;  %2986 = vmatprep.mubr.msk.f32.mxu0 %vm3606_vm2, %v3607_v20 }
  0x66   :  { %3219 = vmatprep.subr.bf16.mxu0 %v3605_v10 }
  0x69   :  { %3221 = vmatpush3.bf16.msra.mxu0 %v3788_v15 }
  0x6a   :  { %3228 = vmatprep.subr.bf16.mxu0 %v3605_v10 }
 0x127   :  { %v2926_v29 = vpop.f32.mrb[0].mxu0 }
 0x128   :  { %v222_v30 = vadd.f32 %v2926_v29, %v2685_v28  ;;  %v216_v31 = vpop.f32.mrb[1].mxu0 }
 0x129   :  { %v217_v32 = vadd.f32 %v2685_v28, %v216_v31 }
 0x12a   :  { %v2695_v33 = vmul.f32 -1.442695, %v222_v30  ;;  %v2702_v30 = vld [vmem:[%s4250_s6] ss:$0 sm:$0xff] }
 0x12b   :  { %v2694_v34 = vmul.f32 -1.442695, %v217_v32  ;;  %v2929_v35 = vpop.f32.mrb[2].mxu0 }
 0x12c   :  { %3337 = vpow2.f32 %v2695_v33  ;;  %v232_v36 = vadd.f32 %v2929_v35, %v2685_v28  ;;  %v226_v37 = vpop.f32.mrb[3].mxu0 }
 0x12d   :  { %3339 = vpow2.f32 %v2694_v34  ;;  %v227_v38 = vadd.f32 %v2685_v28, %v226_v37 }
 0x12e   :  { %v2697_v39 = vmul.f32 -1.442695, %v232_v36 }
 0x12f   :  { %v2696_v40 = vmul.f32 -1.442695, %v227_v38  ;;  %v2932_v41 = vpop.f32.mrb[4].mxu0 }
 0x130   :  { %3341 = vpow2.f32 %v2697_v39  ;;  %v242_v42 = vadd.f32 %v2932_v41, %v2685_v28  ;;  %v236_v43 = vpop.f32.mrb[5].mxu0 }
 0x131   :  { %3343 = vpow2.f32 %v2696_v40  ;;  %v237_v44 = vadd.f32 %v2685_v28, %v236_v43 }
 0x132   :  { %v2699_v45 = vmul.f32 -1.442695, %v242_v42 }
 0x133   :  { %v2698_v46 = vmul.f32 -1.442695, %v237_v44  ;;  %v2935_v47 = vpop.f32.mrb[6].mxu0 }
 0x134   :  { %3345 = vpow2.f32 %v2699_v45  ;;  %v252_v48 = vadd.f32 %v2935_v47, %v2685_v28  ;;  %v246_v49 = vpop.f32.mrb[7].mxu0 }
 0x135   :  { %3347 = vpow2.f32 %v2698_v46  ;;  %v247_v50 = vadd.f32 %v2685_v28, %v246_v49 }
 0x136   :  { %v3338_v52 = vpop.eup %3337  ;;  %v2701_v53 = vmul.f32 -1.442695, %v252_v48 }
 0x137   :  { %v3340_v54 = vpop.eup %3339  ;;  %v280_v55 = vadd.f32 1.0, %v3338_v52  ;;  %v2700_v56 = vmul.f32 -1.442695, %v247_v50  ;;  %v551_v57 = vpop.f32.mrb[8].mxu0 }
 0x138   :  { %v279_v58 = vadd.f32 1.0, %v3340_v54  ;;  %3349 = vpow2.f32 %v2701_v53  ;;  %v3841_v59 = vadd.f32 %v3838_v51, %v551_v57  ;;  %v2966_v60 = vpop.f32.mrb[9].mxu0 }
 0x139   :  { %3351 = vrcp.f32 %v280_v55 }
 0x13a   :  { %v3342_v61 = vpop.eup %3341  ;;  %3353 = vrcp.f32 %v279_v58  ;;  %563 = vrot.lane.b32.xlu0 %v3841_v59, %s3608_s18 }
 0x13b   :  { %v3344_v62 = vpop.eup %3343  ;;  %v282_v63 = vadd.f32 1.0, %v3342_v61  ;;  %3355 = vpow2.f32 %v2700_v56 }
 0x13c   :  { %v281_v0 = vadd.f32 1.0, %v3344_v62 }
 0x13d   :  { %3357 = vrcp.f32 %v282_v63 }
 0x13e   :  { %v3346_v1 = vpop.eup %3345  ;;  %3359 = vrcp.f32 %v281_v0 }
 0x13f   :  { %v3348_v2 = vpop.eup %3347  ;;  %v284_v3 = vadd.f32 1.0, %v3346_v1 }
 0x140   :  { %v283_v4 = vadd.f32 1.0, %v3348_v2 }
 0x141   :  { %3361 = vrcp.f32 %v284_v3 }
 0x142   :  { %v3350_v5 = vpop.eup %3349  ;;  %3363 = vrcp.f32 %v283_v4 }
 0x143   :  { %v3352_v6 = vpop.eup %3351  ;;  %v286_v7 = vadd.f32 1.0, %v3350_v5 }
 0x144   :  { %v3354_v9 = vpop.eup %3353  ;;  %305 = vst.msk [vmem:[#allocation3 + $0x8] sm:$0xff] %vm105_vm1, %v3352_v6 }
 0x145   :  { %v3356_v11 = vpop.eup %3355  ;;  %304 = vst.msk [vmem:[#allocation3] sm:$0xff] %vm105_vm1, %v3354_v9  ;;  %3365 = vrcp.f32 %v286_v7 }
 0x146   :  { %v285_v12 = vadd.f32 1.0, %v3356_v11 }
 0x147   :  { %v3358_v13 = vpop.eup %3357 }
 0x148   :  { %v3360_v14 = vpop.eup %3359  ;;  %307 = vst.msk [vmem:[#allocation3 + $0x18] sm:$0xff] %vm105_vm1, %v3358_v13  ;;  %3367 = vrcp.f32 %v285_v12 }
 0x149   :  { %306 = vst.msk [vmem:[#allocation3 + $0x10] sm:$0xff] %vm105_vm1, %v3360_v14 }
 0x14b   :  { %v3362_v16 = vpop.eup %3361  ;;  %v313_v19 = vld [vmem:[#allocation3 + $0x8] sm:$0xff] }
 0x14c   :  { %v3364_v17 = vpop.eup %3363  ;;  %v312_v18 = vld [vmem:[#allocation3] sm:$0xff]  ;;  %309 = vst.msk [vmem:[#allocation3 + $0x28] sm:$0xff] %vm105_vm1, %v3362_v16 }
 0x14d   :  { %2944 = vmatprep.mubr.msk.f32.mxu1 %vm105_vm1, %v312_v18  ;;  %308 = vst.msk [vmem:[#allocation3 + $0x20] sm:$0xff] %vm105_vm1, %v3364_v17 }
 0x14e   :  { %2945 = vmatmul.mubr.msk.f32.vlgmr.msra.gmra.mrb[0].mxu1 %vm105_vm1, %v313_v19 }
 0x14f   :  { %v3366_v22 = vpop.eup %3365  ;;  %v315_v23 = vld [vmem:[#allocation3 + $0x18] sm:$0xff]  ;;  %3212 = vmatpush3.bf16.msra.mxu1 %v3769_v8 }
 0x150   :  { %311 = vst.msk [vmem:[#allocation3 + $0x38] sm:$0xff] %vm105_vm1, %v3366_v22  ;;  %v314_v24 = vld [vmem:[#allocation3 + $0x10] sm:$0xff]  ;;  %3213 = vmatprep.subr.bf16.mxu1 %v3605_v10 }
 0x151   :  { %2947 = vmatprep.mubr.msk.f32.mxu1 %vm105_vm1, %v314_v24 }
 0x152   :  { %v3368_v25 = vpop.eup %3367  ;;  %2948 = vmatmul.mubr.msk.f32.gmra.mrb[2].mxu1 %vm105_vm1, %v315_v23 }
 0x153   :  { %310 = vst.msk [vmem:[#allocation3 + $0x30] sm:$0xff] %vm105_vm1, %v3368_v25  ;;  %v317_v26 = vld [vmem:[#allocation3 + $0x28] sm:$0xff]  ;;  %3215 = vmatpush3.bf16.msra.mxu1 %v3788_v15 }
 0x154   :  { %v316_v27 = vld [vmem:[#allocation3 + $0x20] sm:$0xff]  ;;  %3222 = vmatprep.subr.bf16.mxu1 %v3605_v10 }
 0x155   :  { %2950 = vmatprep.mubr.msk.f32.mxu1 %vm105_vm1, %v316_v27 }
 0x156   :  { %2951 = vmatmul.mubr.msk.f32.gmra.mrb[4].mxu1 %vm105_vm1, %v317_v26 }
 0x157   :  { %v319_v28 = vld [vmem:[#allocation3 + $0x38] sm:$0xff] }
 0x15a   :  { %v318_v29 = vld [vmem:[#allocation3 + $0x30] sm:$0xff] }
 0x15b   :  { %2953 = vmatprep.mubr.msk.f32.mxu1 %vm105_vm1, %v318_v29 }
 0x15c   :  { %2954 = vmatmul.mubr.msk.f32.gmra.mrb[6].mxu1 %vm105_vm1, %v319_v28 }
 0x15d   :  { %2975 = vmatprep.mubr.msk.f32.mxu1 %vm3606_vm2, %v3607_v20 }
 0x1ac   :  { %v564_v53 = vpop.permute.xlu0 %563 }
 0x221   :  { %v2946_v31 = vpop.f32.mrb[0].mxu1 }
 0x222   :  { %v427_v32 = vadd.f32 %v2946_v31, %v2702_v30  ;;  %v421_v33 = vpop.f32.mrb[1].mxu1 }
 0x223   :  { %v422_v34 = vadd.f32 %v2702_v30, %v421_v33 }
 0x224   :  { %462 = vst.msk [vmem:[#allocation4 + $0x8] sm:$0xff] %vm460_vm3, %v427_v32 }
 0x225   :  { %461 = vst.msk [vmem:[#allocation4] sm:$0xff] %vm460_vm3, %v422_v34  ;;  %v2949_v40 = vpop.f32.mrb[2].mxu1 }
 0x226   :  { %v431_v41 = vpop.f32.mrb[3].mxu1  ;;  %v437_v42 = vadd.f32 %v2949_v40, %v2702_v30 }
 0x227   :  { %v432_v43 = vadd.f32 %v2702_v30, %v431_v41 }
 0x228   :  { %464 = vst.msk [vmem:[#allocation4 + $0x18] sm:$0xff] %vm460_vm3, %v437_v42 }
 0x229   :  { %v2952_v44 = vpop.f32.mrb[4].mxu1  ;;  %463 = vst.msk [vmem:[#allocation4 + $0x10] sm:$0xff] %vm460_vm3, %v432_v43 }
 0x22a   :  { %v447_v45 = vadd.f32 %v2952_v44, %v2702_v30  ;;  %v441_v46 = vpop.f32.mrb[5].mxu1 }
 0x22b   :  { %v442_v47 = vadd.f32 %v2702_v30, %v441_v46  ;;  %v590_v4 = vld [vmem:[#allocation4 + $0x8] sm:$0xff] }
 0x22c   :  { %v475_v35 = vld [vmem:[#allocation4] sm:$0xff]  ;;  %466 = vst.msk [vmem:[#allocation4 + $0x28] sm:$0xff] %vm460_vm3, %v447_v45 }
 0x22d   :  { %v555_v36 = vadd.f32 %v3841_v59, %v475_v35  ;;  %465 = vst.msk [vmem:[#allocation4 + $0x20] sm:$0xff] %vm460_vm3, %v442_v47 }
 0x22f   :  { %v2713_v37 = vmul.f32 -1.442695, %v555_v36  ;;  %v2955_v48 = vpop.f32.mrb[6].mxu1 }
 0x230   :  { %v457_v49 = vadd.f32 %v2955_v48, %v2702_v30  ;;  %v451_v50 = vpop.f32.mrb[7].mxu1  ;;  %v696_v29 = vld [vmem:[#allocation4 + $0x10] sm:$0xff] }
 0x231   :  { %3369 = vpow2.f32 %v2713_v37  ;;  %v452_v52 = vadd.f32 %v2702_v30, %v451_v50 }
 0x232   :  { %468 = vst.msk [vmem:[#allocation4 + $0x38] sm:$0xff] %vm460_vm3, %v457_v49  ;;  %v802_v49 = vld [vmem:[#allocation4 + $0x18] sm:$0xff] }
 0x233   :  { %467 = vst.msk [vmem:[#allocation4 + $0x30] sm:$0xff] %vm460_vm3, %v452_v52 }
 0x23b   :  { %v3370_v38 = vpop.eup %3369 }
 0x23c   :  { %v559_v39 = vadd.f32 1.0, %v3370_v38 }
 0x23e   :  { %3371 = vrcp.f32 %v559_v39 }
 0x248   :  { %v3372_v54 = vpop.eup %3371 }
 0x249   :  { %v566_v55 = vmul.f32 %v3372_v54, %v564_v53  ;;  %v573_v60 = vsub.f32 1.0, %v3372_v54 }
 0x24b   :  { %568 = vrot.lane.b32.xlu0 %v566_v55, %s3608_s18 }
 0x2bd   :  { %v569_v56 = vpop.permute.xlu0 %568 }
 0x2be   :  { %v571_v57 = vadd.f32 %v569_v56, %v475_v35 }
 0x2c0   :  { %3373 = vtanh.f32 %v571_v57 }
 0x2ca   :  { %v3374_v58 = vpop.eup %3373 }
 0x2cb   :  { %575 = vrot.lane.b32.xlu1 %v3374_v58, %s3609_s24 }
 0x2cf   :  { %579 = vrot.lane.b32.xlu1 %v3812_v21, %s3610_s25 }
 0x33d   :  { %v576_v59 = vpop.permute.xlu1 %575 }
 0x33e   :  { %v578_v62 = vmul.f32 %v576_v59, %v573_v60 }
 0x341   :  { %v580_v61 = vpop.permute.xlu1 %579 }
 0x342   :  { %v582_v63 = vmul.f32 %v3372_v54, %v580_v61 }
 0x344   :  { %v583_v0 = vadd.f32 %v582_v63, %v578_v62 }
 0x346   :  { %585 = vrot.lane.b32.xlu0 %v583_v0, %s3609_s24 }
 0x3b8   :  { %v586_v1 = vpop.permute.xlu0 %585 }
 0x3b9   :  { %588 = vst.msk [vmem:[#allocation3] sm:$0xff] %vm105_vm1, %v586_v1  ;;  %2976 = vmatmul.mubr.msk.f32.vlgmr.msra.gmra.mrb[8].mxu1 %vm105_vm1, %v586_v1 }
 0x3ba   :  { %3224 = vmatpush3.bf16.msra.mxu1 %v3769_v8  ;;  %2997 = vmatprep.mubr.msk.f32.mxu1 %vm3606_vm2, %v3607_v20 }
 0x3bb   :  { %3225 = vmatprep.subr.bf16.mxu1 %v3605_v10 }
 0x3be   :  { %3227 = vmatpush3.bf16.msra.mxu1 %v3788_v15 }
 0x3bf   :  { %3234 = vmatprep.subr.bf16.mxu1 %v3605_v10 }
 0x48c   :  { %v659_v21 = vpop.f32.mrb[8].mxu1 }
 0x48d   :  { %v660_v2 = vadd.f32 %v3838_v51, %v659_v21  ;;  %v2977_v3 = vpop.f32.mrb[9].mxu1 }
 0x48f   :  { %671 = vrot.lane.b32.xlu1 %v660_v2, %s3608_s18  ;;  %v663_v5 = vadd.f32 %v660_v2, %v590_v4 }
 0x491   :  { %v2715_v6 = vmul.f32 -1.442695, %v663_v5  ;;  %v908_v5 = vld [vmem:[#allocation4 + $0x20] sm:$0xff] }
 0x493   :  { %3375 = vpow2.f32 %v2715_v6 }
 0x49d   :  { %v3376_v7 = vpop.eup %3375 }
 0x49e   :  { %v667_v9 = vadd.f32 1.0, %v3376_v7 }
 0x4a0   :  { %3377 = vrcp.f32 %v667_v9 }
 0x4aa   :  { %v3378_v11 = vpop.eup %3377 }
 0x4ab   :  { %v681_v18 = vsub.f32 1.0, %v3378_v11  ;;  %v687_v22 = vmul.f32 %v3378_v11, %v583_v0 }
 0x501   :  { %v672_v12 = vpop.permute.xlu1 %671 }
 0x502   :  { %v674_v13 = vmul.f32 %v3378_v11, %v672_v12 }
 0x504   :  { %676 = vrot.lane.b32.xlu0 %v674_v13, %s3608_s18 }
 0x576   :  { %v677_v14 = vpop.permute.xlu0 %676 }
 0x577   :  { %v679_v16 = vadd.f32 %v677_v14, %v590_v4 }
 0x579   :  { %3379 = vtanh.f32 %v679_v16 }
 0x583   :  { %v3380_v17 = vpop.eup %3379 }
 0x584   :  { %683 = vrot.lane.b32.xlu1 %v3380_v17, %s3609_s24 }
 0x5f6   :  { %v684_v19 = vpop.permute.xlu1 %683 }
 0x5f7   :  { %v686_v23 = vmul.f32 %v684_v19, %v681_v18 }
 0x5f9   :  { %v688_v24 = vadd.f32 %v687_v22, %v686_v23 }
 0x5fb   :  { %690 = vrot.lane.b32.xlu0 %v688_v24, %s3609_s24 }
 0x66d   :  { %v691_v25 = vpop.permute.xlu0 %690 }
 0x66e   :  { %694 = vst.msk [vmem:[#allocation3 + $0x8] sm:$0xff] %vm105_vm1, %v691_v25  ;;  %2987 = vmatmul.mubr.msk.f32.vlgmr.msra.gmra.mrb[10].mxu0 %vm105_vm1, %v691_v25 }
 0x66f   :  { %3230 = vmatpush3.bf16.msra.mxu0 %v3769_v8  ;;  %3008 = vmatprep.mubr.msk.f32.mxu0 %vm3606_vm2, %v3607_v20 }
 0x670   :  { %3231 = vmatprep.subr.bf16.mxu0 %v3605_v10 }
 0x673   :  { %3233 = vmatpush3.bf16.msra.mxu0 %v3788_v15 }
 0x674   :  { %3240 = vmatprep.subr.bf16.mxu0 %v3605_v10 }
 0x741   :  { %v765_v26 = vpop.f32.mrb[10].mxu0 }
 0x742   :  { %v766_v27 = vadd.f32 %v3838_v51, %v765_v26  ;;  %v2988_v28 = vpop.f32.mrb[11].mxu0 }
 0x744   :  { %777 = vrot.lane.b32.xlu1 %v766_v27, %s3608_s18  ;;  %v769_v30 = vadd.f32 %v766_v27, %v696_v29 }
 0x746   :  { %v2717_v31 = vmul.f32 -1.442695, %v769_v30  ;;  %v1014_v30 = vld [vmem:[#allocation4 + $0x28] sm:$0xff] }
 0x748   :  { %3381 = vpow2.f32 %v2717_v31 }
 0x752   :  { %v3382_v32 = vpop.eup %3381 }
 0x753   :  { %v773_v33 = vadd.f32 1.0, %v3382_v32 }
 0x755   :  { %3383 = vrcp.f32 %v773_v33 }
 0x75f   :  { %v3384_v34 = vpop.eup %3383 }
 0x760   :  { %v787_v40 = vsub.f32 1.0, %v3384_v34  ;;  %v793_v42 = vmul.f32 %v3384_v34, %v688_v24 }
 0x7b6   :  { %v778_v35 = vpop.permute.xlu1 %777 }
 0x7b7   :  { %v780_v36 = vmul.f32 %v3384_v34, %v778_v35 }
 0x7b9   :  { %782 = vrot.lane.b32.xlu0 %v780_v36, %s3608_s18 }
 0x82b   :  { %v783_v37 = vpop.permute.xlu0 %782 }
 0x82c   :  { %v785_v38 = vadd.f32 %v783_v37, %v696_v29 }
 0x82e   :  { %3385 = vtanh.f32 %v785_v38  ;;  %v2728_v38 = vld [vmem:[%s4248_s4 + $0x20] sm:$0xff] }
 0x838   :  { %v3386_v39 = vpop.eup %3385 }
 0x839   :  { %789 = vrot.lane.b32.xlu1 %v3386_v39, %s3609_s24  ;;  %v2729_v39 = vld [vmem:[%s4248_s4 + $0x28] sm:$0xff] }
 0x8ab   :  { %v790_v41 = vpop.permute.xlu1 %789 }
 0x8ac   :  { %v792_v43 = vmul.f32 %v790_v41, %v787_v40  ;;  %v3252_v40 = vpack.c.bf16 %v2729_v39, %v2728_v38 }
 0x8ae   :  { %v794_v44 = vadd.f32 %v793_v42, %v792_v43 }
 0x8b0   :  { %796 = vrot.lane.b32.xlu0 %v794_v44, %s3609_s24 }
 0x922   :  { %v797_v45 = vpop.permute.xlu0 %796 }
 0x923   :  { %800 = vst.msk [vmem:[#allocation3 + $0x10] sm:$0xff] %vm105_vm1, %v797_v45  ;;  %2998 = vmatmul.mubr.msk.f32.vlgmr.msra.gmra.mrb[10].mxu1 %vm105_vm1, %v797_v45 }
 0x924   :  { %3236 = vmatpush3.bf16.msra.mxu1 %v3769_v8  ;;  %3019 = vmatprep.mubr.msk.f32.mxu1 %vm3606_vm2, %v3607_v20 }
 0x925   :  { %3237 = vmatprep.subr.bf16.mxu1 %v3605_v10 }
 0x928   :  { %3239 = vmatpush3.bf16.msra.mxu1 %v3788_v15 }
 0x929   :  { %3246 = vmatprep.subr.bf16.mxu1 %v3605_v10 }
 0x9f6   :  { %v871_v46 = vpop.f32.mrb[10].mxu1 }
 0x9f7   :  { %v872_v47 = vadd.f32 %v3838_v51, %v871_v46  ;;  %v2999_v48 = vpop.f32.mrb[11].mxu1 }
 0x9f8   :  { %v2731_v48 = vld [vmem:[%s4248_s4 + $0x38] sm:$0xff] }
 0x9f9   :  { %883 = vrot.lane.b32.xlu1 %v872_v47, %s3608_s18  ;;  %v875_v50 = vadd.f32 %v872_v47, %v802_v49  ;;  %v2730_v47 = vld [vmem:[%s4248_s4 + $0x30] sm:$0xff] }
 0x9fb   :  { %v2719_v52 = vmul.f32 -1.442695, %v875_v50 }
 0x9fd   :  { %3387 = vpow2.f32 %v2719_v52  ;;  %v1332_v52 = vld [vmem:[#allocation3] sm:$0xff] }
 0xa07   :  { %v3388_v53 = vpop.eup %3387 }
 0xa08   :  { %v879_v54 = vadd.f32 1.0, %v3388_v53  ;;  %v1333_v53 = vld [vmem:[#allocation3 + $0x8] sm:$0xff] }
 0xa0a   :  { %3389 = vrcp.f32 %v879_v54  ;;  %v1334_v54 = vld [vmem:[#allocation3 + $0x10] sm:$0xff] }
 0xa14   :  { %v3390_v55 = vpop.eup %3389 }
 0xa15   :  { %v893_v61 = vsub.f32 1.0, %v3390_v55  ;;  %v899_v63 = vmul.f32 %v3390_v55, %v794_v44 }
 0xa6b   :  { %v884_v56 = vpop.permute.xlu1 %883 }
 0xa6c   :  { %v886_v57 = vmul.f32 %v3390_v55, %v884_v56 }
 0xa6e   :  { %888 = vrot.lane.b32.xlu0 %v886_v57, %s3608_s18 }
 0xae0   :  { %v889_v58 = vpop.permute.xlu0 %888 }
 0xae1   :  { %v891_v59 = vadd.f32 %v889_v58, %v802_v49  ;;  %v3256_v49 = vpack.c.bf16 %v2731_v48, %v2730_v47 }
 0xae3   :  { %3391 = vtanh.f32 %v891_v59 }
 0xaed   :  { %v3392_v60 = vpop.eup %3391 }
 0xaee   :  { %895 = vrot.lane.b32.xlu1 %v3392_v60, %s3609_s24 }
 0xb60   :  { %v896_v62 = vpop.permute.xlu1 %895 }
 0xb61   :  { %v898_v0 = vmul.f32 %v896_v62, %v893_v61  ;;  %v3977_v61 = vld [vmem:[%s4250_s6 + $0x1] ss:$0 sm:$0xff] }
 0xb63   :  { %v900_v1 = vadd.f32 %v899_v63, %v898_v0 }
 0xb65   :  { %902 = vrot.lane.b32.xlu0 %v900_v1, %s3609_s24 }
 0xbd7   :  { %v903_v21 = vpop.permute.xlu0 %902 }
 0xbd8   :  { %906 = vst.msk [vmem:[#allocation3 + $0x18] sm:$0xff] %vm105_vm1, %v903_v21  ;;  %3009 = vmatmul.mubr.msk.f32.vlgmr.msra.gmra.mrb[12].mxu0 %vm105_vm1, %v903_v21 }
 0xbd9   :  { %3242 = vmatpush3.bf16.msra.mxu0 %v3769_v8  ;;  %3030 = vmatprep.mubr.msk.f32.mxu0 %vm3606_vm2, %v3607_v20 }
 0xbda   :  { %3243 = vmatprep.subr.bf16.mxu0 %v3605_v10 }
 0xbdd   :  { %3245 = vmatpush3.bf16.msra.mxu0 %v3788_v15 }
 0xbde   :  { %3253 = vmatprep.subr.bf16.mxu0 %v3252_v40 }
 0xbdf   :  { %v1335_v55 = vld [vmem:[#allocation3 + $0x18] sm:$0xff] }
 0xcab   :  { %v977_v2 = vpop.f32.mrb[12].mxu0 }
 0xcac   :  { %v978_v3 = vadd.f32 %v3838_v51, %v977_v2  ;;  %v3010_v4 = vpop.f32.mrb[13].mxu0 }
 0xcae   :  { %989 = vrot.lane.b32.xlu1 %v978_v3, %s3608_s18  ;;  %v981_v6 = vadd.f32 %v978_v3, %v908_v5 }
 0xcb0   :  { %v2721_v7 = vmul.f32 -1.442695, %v981_v6 }
 0xcb2   :  { %3393 = vpow2.f32 %v2721_v7 }
 0xcbc   :  { %v3394_v9 = vpop.eup %3393 }
 0xcbd   :  { %v985_v11 = vadd.f32 1.0, %v3394_v9 }
 0xcbf   :  { %3395 = vrcp.f32 %v985_v11  ;;  %v1120_v11 = vld [vmem:[#allocation4 + $0x30] sm:$0xff] }
 0xcc9   :  { %v3396_v12 = vpop.eup %3395 }
 0xcca   :  { %v999_v19 = vsub.f32 1.0, %v3396_v12  ;;  %v1005_v23 = vmul.f32 %v3396_v12, %v900_v1 }
 0xd20   :  { %v990_v13 = vpop.permute.xlu1 %989 }
 0xd21   :  { %v992_v14 = vmul.f32 %v3396_v12, %v990_v13 }
 0xd23   :  { %994 = vrot.lane.b32.xlu0 %v992_v14, %s3608_s18 }
 0xd95   :  { %v995_v16 = vpop.permute.xlu0 %994 }
 0xd96   :  { %v997_v17 = vadd.f32 %v995_v16, %v908_v5 }
 0xd98   :  { %3397 = vtanh.f32 %v997_v17 }
 0xda2   :  { %v3398_v18 = vpop.eup %3397 }
 0xda3   :  { %1001 = vrot.lane.b32.xlu1 %v3398_v18, %s3609_s24 }
 0xe15   :  { %v1002_v22 = vpop.permute.xlu1 %1001 }
 0xe16   :  { %v1004_v24 = vmul.f32 %v1002_v22, %v999_v19 }
 0xe18   :  { %v1006_v25 = vadd.f32 %v1005_v23, %v1004_v24 }
 0xe1a   :  { %1008 = vrot.lane.b32.xlu0 %v1006_v25, %s3609_s24 }
 0xe8c   :  { %v1009_v26 = vpop.permute.xlu0 %1008 }
 0xe8d   :  { %1012 = vst.msk [vmem:[#allocation3 + $0x20] sm:$0xff] %vm105_vm1, %v1009_v26  ;;  %3020 = vmatmul.mubr.msk.f32.vlgmr.msra.gmra.mrb[12].mxu1 %vm105_vm1, %v1009_v26  ;;  %v2743_v26 = vld [vmem:[%s4249_s5 + $0x28] sm:$0xff] }
 0xe8e   :  { %3248 = vmatpush3.bf16.msra.mxu1 %v3769_v8  ;;  %3041 = vmatprep.mubr.msk.f32.mxu1 %vm3606_vm2, %v3607_v20 }
 0xe8f   :  { %3249 = vmatprep.subr.bf16.mxu1 %v3605_v10 }
 0xe92   :  { %3251 = vmatpush3.bf16.msra.mxu1 %v3788_v15 }
 0xe93   :  { %3260 = vmatprep.subr.bf16.mxu1 %v3605_v10 }
 0xe94   :  { %v1336_v56 = vld [vmem:[#allocation3 + $0x20] sm:$0xff] }
 0xf60   :  { %v1083_v27 = vpop.f32.mrb[12].mxu1 }
 0xf61   :  { %v1084_v28 = vadd.f32 %v3838_v51, %v1083_v27  ;;  %v3021_v29 = vpop.f32.mrb[13].mxu1 }
 0xf62   :  { %v2744_v29 = vld [vmem:[%s4249_s5 + $0x30] sm:$0xff] }
 0xf63   :  { %1095 = vrot.lane.b32.xlu1 %v1084_v28, %s3608_s18  ;;  %v1087_v31 = vadd.f32 %v1084_v28, %v1014_v30  ;;  %v104_v28 = vld [vmem:[#allocation6 + $0x8] sm:$0xff] }
 0xf64   :  { %107 = vst.msk [vmem:[#allocation2 + $0x8] sm:$0xff] %vm105_vm1, %v104_v28 }
 0xf65   :  { %v2723_v32 = vmul.f32 -1.442695, %v1087_v31 }
 0xf67   :  { %3399 = vpow2.f32 %v2723_v32 }
 0xf71   :  { %v3400_v8 = vpop.eup %3399 }
 0xf72   :  { %v1091_v33 = vadd.f32 1.0, %v3400_v8 }
 0xf74   :  { %3401 = vrcp.f32 %v1091_v33 }
 0xf7e   :  { %v3402_v34 = vpop.eup %3401 }
 0xf7f   :  { %v1105_v42 = vsub.f32 1.0, %v3402_v34  ;;  %v1111_v44 = vmul.f32 %v3402_v34, %v1006_v25  ;;  %v2742_v25 = vld [vmem:[%s4249_s5 + $0x20] sm:$0xff] }
 0xf80   :  { %v3999_v27 = vpack.c.bf16 %v2743_v26, %v2742_v25 }
 0xfd5   :  { %v1096_v35 = vpop.permute.xlu1 %1095 }
 0xfd6   :  { %v1098_v36 = vmul.f32 %v3402_v34, %v1096_v35 }
 0xfd8   :  { %1100 = vrot.lane.b32.xlu0 %v1098_v36, %s3608_s18 }
0x104a   :  { %v1101_v15 = vpop.permute.xlu0 %1100 }
0x104b   :  { %v1103_v37 = vadd.f32 %v1101_v15, %v1014_v30  ;;  %v2745_v30 = vld [vmem:[%s4249_s5 + $0x38] sm:$0xff]  ;;  %v1498_v15 = vld [vmem:[#allocation2 + $0x8] sm:$0xff] }
0x104c   :  { %v4010_v31 = vpack.c.bf16 %v2745_v30, %v2744_v29 }
0x104d   :  { %3403 = vtanh.f32 %v1103_v37 }
0x1057   :  { %v3404_v41 = vpop.eup %3403 }
0x1058   :  { %1107 = vrot.lane.b32.xlu1 %v3404_v41, %s3609_s24 }
0x10ca   :  { %v1108_v43 = vpop.permute.xlu1 %1107 }
0x10cb   :  { %v1110_v45 = vmul.f32 %v1108_v43, %v1105_v42 }
0x10cd   :  { %v3953_v46 = vadd.f32 %v1111_v44, %v1110_v45 }
0x10cf   :  { %1114 = vrot.lane.b32.xlu0 %v3953_v46, %s3609_s24 }
0x1141   :  { %v1115_v50 = vpop.permute.xlu0 %1114 }
0x1142   :  { %1118 = vst.msk [vmem:[#allocation3 + $0x28] sm:$0xff] %vm105_vm1, %v1115_v50  ;;  %3031 = vmatmul.mubr.msk.f32.vlgmr.msra.gmra.mrb[14].mxu0 %vm105_vm1, %v1115_v50 }
0x1143   :  { %3255 = vmatpush3.bf16.msra.mxu0 %v3252_v40  ;;  %3052 = vmatprep.mubr.msk.f32.mxu0 %vm105_vm1, %v1332_v52  ;;  %v4038_v40 = vld [vmem:[%s4251_s7 + $0x1] ss:$0 sm:$0xff] }
0x1144   :  { %3257 = vmatprep.subr.bf16.mxu0 %v3256_v49 }
0x1147   :  { %3259 = vmatpush3.bf16.msra.mxu0 %v3256_v49 }
0x1148   :  { %3272 = vmatprep.subr.bf16.mxu0 %v3605_v10 }
0x1149   :  { %v1337_v57 = vld [vmem:[#allocation3 + $0x28] sm:$0xff] }
0x114a   :  { %3053 = vmatmul.mubr.msk.f32.vlgmr.msra.gmra.mrb[16].mxu0 %vm105_vm1, %v1333_v53 }
0x114b   :  { %3055 = vmatprep.mubr.msk.f32.mxu0 %vm105_vm1, %v1334_v54  ;;  %3274 = vmatpush3.bf16.msra.mxu0 %v3999_v27  ;;  %v1226_v54 = vld [vmem:[#allocation4 + $0x38] sm:$0xff] }
0x114c   :  { %3275 = vmatprep.subr.bf16.mxu0 %v3605_v10 }
0x114e   :  { %3056 = vmatmul.mubr.msk.f32.gmra.mrb[18].mxu0 %vm105_vm1, %v1335_v55 }
0x114f   :  { %3058 = vmatprep.mubr.msk.f32.mxu0 %vm105_vm1, %v1336_v56  ;;  %3277 = vmatpush3.bf16.msra.mxu0 %v4010_v31 }
0x1150   :  { %3284 = vmatprep.subr.bf16.mxu0 %v3605_v10 }
0x1152   :  { %3059 = vmatmul.mubr.msk.f32.gmra.mrb[20].mxu0 %vm105_vm1, %v1337_v57 }
0x1215   :  { %v1189_v58 = vpop.f32.mrb[14].mxu0 }
0x1216   :  { %v1190_v59 = vadd.f32 %v3838_v51, %v1189_v58  ;;  %v3032_v60 = vpop.f32.mrb[15].mxu0 }
0x1218   :  { %1201 = vrot.lane.b32.xlu1 %v1190_v59, %s3608_s18  ;;  %v1193_v12 = vadd.f32 %v1190_v59, %v1120_v11 }
0x121a   :  { %v2725_v13 = vmul.f32 -1.442695, %v1193_v12 }
0x121c   :  { %3405 = vpow2.f32 %v2725_v13 }
0x121d   :  { %v3054_v62 = vpop.f32.mrb[16].mxu0 }
0x121e   :  { %v1449_v63 = vadd.f32 %v3054_v62, %v3977_v61  ;;  %v1443_v0 = vpop.f32.mrb[17].mxu0 }
0x121f   :  { %v1444_v1 = vadd.f32 %v3977_v61, %v1443_v0 }
0x1220   :  { %1483 = vst.msk [vmem:[#allocation4 + $0x8] sm:$0xff] %vm460_vm3, %v1449_v63 }
0x1221   :  { %1482 = vst.msk [vmem:[#allocation4] sm:$0xff] %vm460_vm3, %v1444_v1  ;;  %v3057_v21 = vpop.f32.mrb[18].mxu0 }
0x1222   :  { %v1459_v2 = vadd.f32 %v3057_v21, %v3977_v61  ;;  %v1453_v3 = vpop.f32.mrb[19].mxu0 }
0x1223   :  { %v1454_v4 = vadd.f32 %v3977_v61, %v1453_v3 }
0x1224   :  { %1485 = vst.msk [vmem:[#allocation4 + $0x18] sm:$0xff] %vm460_vm3, %v1459_v2 }
0x1225   :  { %1484 = vst.msk [vmem:[#allocation4 + $0x10] sm:$0xff] %vm460_vm3, %v1454_v4  ;;  %v3060_v5 = vpop.f32.mrb[20].mxu0 }
0x1226   :  { %v1469_v6 = vadd.f32 %v3060_v5, %v3977_v61  ;;  %v1463_v7 = vpop.f32.mrb[21].mxu0  ;;  %v3406_v14 = vpop.eup %3405 }
0x1227   :  { %v1464_v9 = vadd.f32 %v3977_v61, %v1463_v7  ;;  %v1197_v16 = vadd.f32 1.0, %v3406_v14  ;;  %v1613_v26 = vld [vmem:[#allocation4 + $0x8] sm:$0xff] }
0x1228   :  { %1487 = vst.msk [vmem:[#allocation4 + $0x28] sm:$0xff] %vm460_vm3, %v1469_v6  ;;  %v1499_v44 = vld [vmem:[#allocation4] sm:$0xff] }
0x1229   :  { %1486 = vst.msk [vmem:[#allocation4 + $0x20] sm:$0xff] %vm460_vm3, %v1464_v9  ;;  %3407 = vrcp.f32 %v1197_v16 }
0x1233   :  { %v3408_v17 = vpop.eup %3407 }
0x1234   :  { %v1211_v32 = vsub.f32 1.0, %v3408_v17  ;;  %v1217_v33 = vmul.f32 %v3408_v17, %v3953_v46 }
0x128a   :  { %v1202_v18 = vpop.permute.xlu1 %1201 }
0x128b   :  { %v1204_v19 = vmul.f32 %v3408_v17, %v1202_v18 }
0x128d   :  { %1206 = vrot.lane.b32.xlu0 %v1204_v19, %s3608_s18 }
0x12ff   :  { %v1207_v22 = vpop.permute.xlu0 %1206 }
0x1300   :  { %v1209_v23 = vadd.f32 %v1207_v22, %v1120_v11 }
0x1302   :  { %3409 = vtanh.f32 %v1209_v23 }
0x130c   :  { %v3410_v24 = vpop.eup %3409 }
0x130d   :  { %1213 = vrot.lane.b32.xlu1 %v3410_v24, %s3609_s24 }
0x137f   :  { %v1214_v8 = vpop.permute.xlu1 %1213 }
0x1380   :  { %v1216_v34 = vmul.f32 %v1214_v8, %v1211_v32 }
0x1382   :  { %v4015_v35 = vadd.f32 %v1217_v33, %v1216_v34 }
0x1384   :  { %1220 = vrot.lane.b32.xlu0 %v4015_v35, %s3609_s24 }
0x13f6   :  { %v1221_v36 = vpop.permute.xlu0 %1220 }
0x13f7   :  { %1224 = vst.msk [vmem:[#allocation3 + $0x30] sm:$0xff] %vm105_vm1, %v1221_v36  ;;  %3042 = vmatmul.mubr.msk.f32.vlgmr.msra.gmra.mrb[14].mxu1 %vm105_vm1, %v1221_v36 }
0x13f8   :  { %3262 = vmatpush3.bf16.msra.mxu1 %v3999_v27  ;;  %3072 = vmatprep.mubr.msk.f32.mxu1 %vm3606_vm2, %v3607_v20 }
0x13f9   :  { %3263 = vmatprep.subr.bf16.mxu1 %v3605_v10 }
0x13fc   :  { %3265 = vmatpush3.bf16.msra.mxu1 %v4010_v31 }
0x13fd   :  { %3266 = vmatprep.subr.bf16.mxu1 %v3605_v10 }
0x13fe   :  { %v1338_v37 = vld [vmem:[#allocation3 + $0x30] sm:$0xff] }
0x13ff   :  { %3073 = vmatmul.mubr.msk.f32.vlgmr.msra.gmra.mrb[16].mxu1 %vm105_vm1, %v1498_v15  ;;  %3061 = vmatprep.mubr.msk.f32.mxu0 %vm105_vm1, %v1338_v37 }
0x1400   :  { %3268 = vmatpush3.bf16.msra.mxu1 %v3999_v27  ;;  %3083 = vmatprep.mubr.msk.f32.mxu1 %vm3606_vm2, %v3607_v20 }
0x1401   :  { %3269 = vmatprep.subr.bf16.mxu1 %v3605_v10 }
0x1404   :  { %3271 = vmatpush3.bf16.msra.mxu1 %v4010_v31 }
0x1405   :  { %3278 = vmatprep.subr.bf16.mxu1 %v3605_v10 }
0x14ca   :  { %v1295_v38 = vpop.f32.mrb[14].mxu1 }
0x14cb   :  { %v3043_v39 = vpop.f32.mrb[15].mxu1  ;;  %v1296_v53 = vadd.f32 %v3838_v51, %v1295_v38 }
0x14cd   :  { %v1299_v55 = vadd.f32 %v1296_v53, %v1226_v54 }
0x14cf   :  { %v2727_v56 = vmul.f32 -1.442695, %v1299_v55 }
0x14d2   :  { %v1575_v41 = vpop.f32.mrb[16].mxu1 }
0x14d3   :  { %v1576_v42 = vadd.f32 %v4038_v40, %v1575_v41  ;;  %v3074_v43 = vpop.f32.mrb[17].mxu1 }
0x14d5   :  { %1587 = vrot.lane.b32.xlu1 %v1576_v42, %s3608_s18  ;;  %v1579_v45 = vadd.f32 %v1576_v42, %v1499_v44 }
0x14d7   :  { %v2749_v46 = vmul.f32 -1.442695, %v1579_v45 }
0x14d9   :  { %3411 = vpow2.f32 %v2749_v46 }
0x14e3   :  { %v3412_v47 = vpop.eup %3411 }
0x14e4   :  { %v1583_v48 = vadd.f32 1.0, %v3412_v47 }
0x14e6   :  { %3413 = vrcp.f32 %v1583_v48 }
0x14e7   :  { %3415 = vpow2.f32 %v2727_v56 }
0x14f0   :  { %v3414_v49 = vpop.eup %3413 }
0x14f1   :  { %v3416_v57 = vpop.eup %3415  ;;  %v1597_v3 = vsub.f32 1.0, %v3414_v49 }
0x14f2   :  { %v1303_v58 = vadd.f32 1.0, %v3416_v57 }
0x14f4   :  { %3417 = vrcp.f32 %v1303_v58 }
0x14fe   :  { %v3418_v63 = vpop.eup %3417 }
0x14ff   :  { %v1317_v12 = vsub.f32 1.0, %v3418_v63  ;;  %v1323_v14 = vmul.f32 %v3418_v63, %v4015_v35 }
0x1547   :  { %v1588_v50 = vpop.permute.xlu1 %1587 }
0x1548   :  { %v1590_v52 = vmul.f32 %v3414_v49, %v1588_v50  ;;  %v1717_v50 = vld [vmem:[#allocation4 + $0x10] sm:$0xff] }
0x154a   :  { %1592 = vrot.lane.b32.xlu0 %v1590_v52, %s3608_s18 }
0x154e   :  { %1603 = vrot.lane.b32.xlu0 %v1498_v15, %s3610_s25 }
0x1552   :  { %1307 = vrot.lane.b32.xlu0 %v1296_v53, %s3608_s18 }
0x15bc   :  { %v1593_v59 = vpop.permute.xlu0 %1592 }
0x15bd   :  { %v1595_v60 = vadd.f32 %v1593_v59, %v1499_v44 }
0x15bf   :  { %3419 = vtanh.f32 %v1595_v60 }
0x15c0   :  { %v1604_v62 = vpop.permute.xlu0 %1603 }
0x15c1   :  { %v1606_v5 = vmul.f32 %v3414_v49, %v1604_v62 }
0x15c4   :  { %v1308_v0 = vpop.permute.xlu0 %1307 }
0x15c5   :  { %v1310_v1 = vmul.f32 %v3418_v63, %v1308_v0 }
0x15c7   :  { %1312 = vrot.lane.b32.xlu0 %v1310_v1, %s3608_s18 }
0x15c9   :  { %v3420_v21 = vpop.eup %3419 }
0x15ca   :  { %1599 = vrot.lane.b32.xlu1 %v3420_v21, %s3609_s24 }
0x1639   :  { %v1313_v51 = vpop.permute.xlu0 %1312 }
0x163a   :  { %v1315_v2 = vadd.f32 %v1313_v51, %v1226_v54 }
0x163c   :  { %3421 = vtanh.f32 %v1315_v2  ;;  %v1600_v4 = vpop.permute.xlu1 %1599 }
0x163d   :  { %v1602_v6 = vmul.f32 %v1600_v4, %v1597_v3 }
0x163f   :  { %v1607_v7 = vadd.f32 %v1606_v5, %v1602_v6  ;;  %v1821_v6 = vld [vmem:[#allocation4 + $0x18] sm:$0xff] }
0x1641   :  { %1609 = vrot.lane.b32.xlu1 %v1607_v7, %s3609_s24 }
0x1646   :  { %v3422_v9 = vpop.eup %3421 }
0x1647   :  { %1319 = vrot.lane.b32.xlu0 %v3422_v9, %s3609_s24 }
0x16b3   :  { %v1610_v11 = vpop.permute.xlu1 %1609 }
0x16b4   :  { %1612 = vst.msk [vmem:[#allocation3] sm:$0xff] %vm105_vm1, %v1610_v11  ;;  %3084 = vmatmul.mubr.msk.f32.vlgmr.msra.gmra.mrb[18].mxu1 %vm105_vm1, %v1610_v11 }
0x16b5   :  { %3280 = vmatpush3.bf16.msra.mxu1 %v3999_v27  ;;  %3105 = vmatprep.mubr.msk.f32.mxu1 %vm3606_vm2, %v3607_v20 }
0x16b6   :  { %3281 = vmatprep.subr.bf16.mxu1 %v3605_v10 }
0x16b9   :  { %v1320_v13 = vpop.permute.xlu0 %1319  ;;  %3283 = vmatpush3.bf16.msra.mxu1 %v4010_v31 }
0x16ba   :  { %v1322_v16 = vmul.f32 %v1320_v13, %v1317_v12  ;;  %3290 = vmatprep.subr.bf16.mxu1 %v3605_v10 }
0x16bc   :  { %v1324_v17 = vadd.f32 %v1323_v14, %v1322_v16 }
0x16be   :  { %1326 = vrot.lane.b32.xlu0 %v1324_v17, %s3609_s24 }
0x1730   :  { %v1327_v18 = vpop.permute.xlu0 %1326 }
0x1731   :  { %1330 = vst.msk [vmem:[#allocation3 + $0x38] sm:$0xff] %vm105_vm1, %v1327_v18  ;;  %1331 = vst.msk [vmem:[#allocation2] sm:$0xff] %vm105_vm1, %v1327_v18 }
0x1738   :  { %v1339_v19 = vld [vmem:[#allocation3 + $0x38] sm:$0xff]  ;;  %v2658_v22 = vld [vmem:[#allocation2] sm:$0xff] }
0x1739   :  { %3062 = vmatmul.mubr.msk.f32.gmra.mrb[22].mxu0 %vm105_vm1, %v1339_v19  ;;  %2660 = vst.msk [vmem:[#allocation14] sm:$0xff] %vm105_vm1, %v2658_v22 }
0x173a   :  { %3094 = vmatprep.mubr.msk.f32.mxu0 %vm3606_vm2, %v3607_v20 }
0x1787   :  { %v1682_v23 = vpop.f32.mrb[18].mxu1 }
0x1788   :  { %v1683_v24 = vadd.f32 %v4038_v40, %v1682_v23  ;;  %v3085_v25 = vpop.f32.mrb[19].mxu1 }
0x178a   :  { %1694 = vrot.lane.b32.xlu1 %v1683_v24, %s3608_s18  ;;  %v1686_v28 = vadd.f32 %v1683_v24, %v1613_v26 }
0x178c   :  { %v2751_v29 = vmul.f32 -1.442695, %v1686_v28 }
0x178e   :  { %3423 = vpow2.f32 %v2751_v29 }
0x1798   :  { %v3424_v30 = vpop.eup %3423 }
0x1799   :  { %v1690_v32 = vadd.f32 1.0, %v3424_v30 }
0x179b   :  { %3425 = vrcp.f32 %v1690_v32 }
0x17a5   :  { %v3426_v8 = vpop.eup %3425 }
0x17a6   :  { %v1704_v42 = vsub.f32 1.0, %v3426_v8  ;;  %v1710_v44 = vmul.f32 %v3426_v8, %v1607_v7 }
0x17fc   :  { %v1695_v33 = vpop.permute.xlu1 %1694 }
0x17fd   :  { %v1697_v34 = vmul.f32 %v3426_v8, %v1695_v33  ;;  %v1925_v8 = vld [vmem:[#allocation4 + $0x20] sm:$0xff] }
0x17ff   :  { %1699 = vrot.lane.b32.xlu1 %v1697_v34, %s3608_s18 }
0x180c   :  { %v3063_v35 = vpop.f32.mrb[22].mxu0 }
0x180d   :  { %v1479_v36 = vadd.f32 %v3063_v35, %v3977_v61  ;;  %v1473_v15 = vpop.f32.mrb[23].mxu0 }
0x180e   :  { %v1474_v37 = vadd.f32 %v3977_v61, %v1473_v15 }
0x180f   :  { %1489 = vst.msk [vmem:[#allocation4 + $0x38] sm:$0xff] %vm460_vm3, %v1479_v36 }
0x1810   :  { %1488 = vst.msk [vmem:[#allocation4 + $0x30] sm:$0xff] %vm460_vm3, %v1474_v37 }
0x1871   :  { %v1700_v38 = vpop.permute.xlu1 %1699 }
0x1872   :  { %v1702_v39 = vadd.f32 %v1700_v38, %v1613_v26 }
0x1874   :  { %3427 = vtanh.f32 %v1702_v39 }
0x187e   :  { %v3428_v41 = vpop.eup %3427 }
0x187f   :  { %1706 = vrot.lane.b32.xlu1 %v3428_v41, %s3609_s24 }
0x18f1   :  { %v1707_v43 = vpop.permute.xlu1 %1706 }
0x18f2   :  { %v1709_v45 = vmul.f32 %v1707_v43, %v1704_v42 }
0x18f4   :  { %v1711_v46 = vadd.f32 %v1710_v44, %v1709_v45 }
0x18f6   :  { %1713 = vrot.lane.b32.xlu1 %v1711_v46, %s3609_s24 }
0x1968   :  { %v1714_v47 = vpop.permute.xlu1 %1713 }
0x1969   :  { %1716 = vst.msk [vmem:[#allocation3 + $0x8] sm:$0xff] %vm105_vm1, %v1714_v47  ;;  %3095 = vmatmul.mubr.msk.f32.vlgmr.msra.gmra.mrb[24].mxu0 %vm105_vm1, %v1714_v47 }
0x196a   :  { %3286 = vmatpush3.bf16.msra.mxu0 %v3999_v27  ;;  %3116 = vmatprep.mubr.msk.f32.mxu0 %vm3606_vm2, %v3607_v20 }
0x196b   :  { %3287 = vmatprep.subr.bf16.mxu0 %v3605_v10 }
0x196e   :  { %3289 = vmatpush3.bf16.msra.mxu0 %v4010_v31 }
0x196f   :  { %3296 = vmatprep.subr.bf16.mxu0 %v3605_v10 }
0x1a3c   :  { %v1786_v61 = vpop.f32.mrb[24].mxu0 }
0x1a3d   :  { %v1787_v48 = vadd.f32 %v4038_v40, %v1786_v61  ;;  %v3096_v49 = vpop.f32.mrb[25].mxu0 }
0x1a3f   :  { %1798 = vrot.lane.b32.xlu0 %v1787_v48, %s3608_s18  ;;  %v1790_v52 = vadd.f32 %v1787_v48, %v1717_v50 }
0x1a41   :  { %v2753_v53 = vmul.f32 -1.442695, %v1790_v52  ;;  %v2029_v52 = vld [vmem:[#allocation4 + $0x28] sm:$0xff] }
0x1a43   :  { %3429 = vpow2.f32 %v2753_v53 }
0x1a4d   :  { %v3430_v54 = vpop.eup %3429 }
0x1a4e   :  { %v1794_v55 = vadd.f32 1.0, %v3430_v54 }
0x1a50   :  { %3431 = vrcp.f32 %v1794_v55 }
0x1a5a   :  { %v3432_v56 = vpop.eup %3431 }
0x1a5b   :  { %v1808_v63 = vsub.f32 1.0, %v3432_v56  ;;  %v1814_v1 = vmul.f32 %v3432_v56, %v1711_v46 }
0x1ab1   :  { %v1799_v57 = vpop.permute.xlu0 %1798 }
0x1ab2   :  { %v1801_v58 = vmul.f32 %v3432_v56, %v1799_v57 }
0x1ab4   :  { %1803 = vrot.lane.b32.xlu1 %v1801_v58, %s3608_s18  ;;  %v2350_v58 = vld [vmem:[#allocation12] sm:$0xff] }
0x1b26   :  { %v1804_v59 = vpop.permute.xlu1 %1803 }
0x1b27   :  { %v1806_v60 = vadd.f32 %v1804_v59, %v1717_v50  ;;  %v2351_v59 = vld [vmem:[#allocation12 + $0x8] sm:$0xff] }
0x1b29   :  { %3433 = vtanh.f32 %v1806_v60  ;;  %v3308_v60 = vpack.c.bf16 %v2351_v59, %v2350_v58 }
0x1b33   :  { %v3434_v62 = vpop.eup %3433 }
0x1b34   :  { %1810 = vrot.lane.b32.xlu0 %v3434_v62, %s3609_s24 }
0x1ba6   :  { %v1811_v0 = vpop.permute.xlu0 %1810 }
0x1ba7   :  { %v1813_v21 = vmul.f32 %v1811_v0, %v1808_v63 }
0x1ba9   :  { %v1815_v51 = vadd.f32 %v1814_v1, %v1813_v21 }
0x1bab   :  { %1817 = vrot.lane.b32.xlu1 %v1815_v51, %s3609_s24 }
0x1c1d   :  { %v1818_v2 = vpop.permute.xlu1 %1817 }
0x1c1e   :  { %1820 = vst.msk [vmem:[#allocation3 + $0x10] sm:$0xff] %vm105_vm1, %v1818_v2  ;;  %3106 = vmatmul.mubr.msk.f32.vlgmr.msra.gmra.mrb[20].mxu1 %vm105_vm1, %v1818_v2  ;;  %v2352_v2 = vld [vmem:[#allocation12 + $0x10] sm:$0xff] }
0x1c1f   :  { %3292 = vmatpush3.bf16.msra.mxu1 %v3999_v27  ;;  %3127 = vmatprep.mubr.msk.f32.mxu1 %vm3606_vm2, %v3607_v20 }
0x1c20   :  { %3293 = vmatprep.subr.bf16.mxu1 %v3605_v10 }
0x1c23   :  { %3295 = vmatpush3.bf16.msra.mxu1 %v4010_v31 }
0x1c24   :  { %3302 = vmatprep.subr.bf16.mxu1 %v3605_v10 }
0x1cf1   :  { %v1890_v3 = vpop.f32.mrb[20].mxu1 }
0x1cf2   :  { %v1891_v4 = vadd.f32 %v4038_v40, %v1890_v3  ;;  %v3107_v5 = vpop.f32.mrb[21].mxu1  ;;  %v2353_v3 = vld [vmem:[#allocation12 + $0x18] sm:$0xff] }
0x1cf4   :  { %1902 = vrot.lane.b32.xlu0 %v1891_v4, %s3608_s18  ;;  %v1894_v7 = vadd.f32 %v1891_v4, %v1821_v6  ;;  %v3312_v4 = vpack.c.bf16 %v2353_v3, %v2352_v2 }
0x1cf6   :  { %v2755_v9 = vmul.f32 -1.442695, %v1894_v7  ;;  %v2343_v7 = vld [vmem:[#allocation3 + $0x8] sm:$0xff] }
0x1cf8   :  { %3435 = vpow2.f32 %v2755_v9  ;;  %v2344_v9 = vld [vmem:[#allocation3 + $0x10] sm:$0xff] }
0x1d02   :  { %v3436_v11 = vpop.eup %3435 }
0x1d03   :  { %v1898_v12 = vadd.f32 1.0, %v3436_v11 }
0x1d05   :  { %3437 = vrcp.f32 %v1898_v12 }
0x1d0f   :  { %v3438_v13 = vpop.eup %3437 }
0x1d10   :  { %v1912_v22 = vsub.f32 1.0, %v3438_v13  ;;  %v1918_v24 = vmul.f32 %v3438_v13, %v1815_v51 }
0x1d66   :  { %v1903_v14 = vpop.permute.xlu0 %1902 }
0x1d67   :  { %v1905_v16 = vmul.f32 %v3438_v13, %v1903_v14 }
0x1d69   :  { %1907 = vrot.lane.b32.xlu1 %v1905_v16, %s3608_s18 }
0x1ddb   :  { %v1908_v17 = vpop.permute.xlu1 %1907 }
0x1ddc   :  { %v1910_v18 = vadd.f32 %v1908_v17, %v1821_v6  ;;  %v2342_v6 = vld [vmem:[#allocation3] sm:$0xff] }
0x1dde   :  { %3439 = vtanh.f32 %v1910_v18 }
0x1de8   :  { %v3440_v19 = vpop.eup %3439 }
0x1de9   :  { %1914 = vrot.lane.b32.xlu0 %v3440_v19, %s3609_s24 }
0x1e5b   :  { %v1915_v23 = vpop.permute.xlu0 %1914 }
0x1e5c   :  { %v1917_v25 = vmul.f32 %v1915_v23, %v1912_v22 }
0x1e5e   :  { %v1919_v26 = vadd.f32 %v1918_v24, %v1917_v25 }
0x1e60   :  { %1921 = vrot.lane.b32.xlu1 %v1919_v26, %s3609_s24 }
0x1ed2   :  { %v1922_v28 = vpop.permute.xlu1 %1921 }
0x1ed3   :  { %1924 = vst.msk [vmem:[#allocation3 + $0x18] sm:$0xff] %vm105_vm1, %v1922_v28  ;;  %3117 = vmatmul.mubr.msk.f32.vlgmr.msra.gmra.mrb[26].mxu0 %vm105_vm1, %v1922_v28 }
0x1ed4   :  { %3298 = vmatpush3.bf16.msra.mxu0 %v3999_v27  ;;  %3138 = vmatprep.mubr.msk.f32.mxu0 %vm3606_vm2, %v3607_v20 }
0x1ed5   :  { %3299 = vmatprep.subr.bf16.mxu0 %v3605_v10 }
0x1ed8   :  { %3301 = vmatpush3.bf16.msra.mxu0 %v4010_v31 }
0x1ed9   :  { %3309 = vmatprep.subr.bf16.mxu0 %v3308_v60 }
0x1eda   :  { %v2345_v11 = vld [vmem:[#allocation3 + $0x18] sm:$0xff] }
0x1fa6   :  { %v1994_v29 = vpop.f32.mrb[26].mxu0 }
0x1fa7   :  { %v1995_v30 = vadd.f32 %v4038_v40, %v1994_v29  ;;  %v3118_v32 = vpop.f32.mrb[27].mxu0 }
0x1fa9   :  { %2006 = vrot.lane.b32.xlu0 %v1995_v30, %s3608_s18  ;;  %v1998_v33 = vadd.f32 %v1995_v30, %v1925_v8 }
0x1fab   :  { %v2757_v34 = vmul.f32 -1.442695, %v1998_v33 }
0x1fad   :  { %3441 = vpow2.f32 %v2757_v34 }
0x1fb7   :  { %v3442_v35 = vpop.eup %3441 }
0x1fb8   :  { %v2002_v36 = vadd.f32 1.0, %v3442_v35 }
0x1fba   :  { %3443 = vrcp.f32 %v2002_v36 }
0x1fc4   :  { %v3444_v15 = vpop.eup %3443 }
0x1fc5   :  { %v2016_v43 = vsub.f32 1.0, %v3444_v15  ;;  %v2022_v45 = vmul.f32 %v3444_v15, %v1919_v26  ;;  %v2133_v26 = vld [vmem:[#allocation4 + $0x30] sm:$0xff] }
0x201b   :  { %v2007_v37 = vpop.permute.xlu0 %2006 }
0x201c   :  { %v2009_v38 = vmul.f32 %v3444_v15, %v2007_v37  ;;  %v2498_v15 = vld [vmem:[%s4254_s10] sm:$0xff]  ;;  %v2499_v37 = vld [vmem:[%s4254_s10 + $0x8] sm:$0xff] }
0x201e   :  { %2011 = vrot.lane.b32.xlu1 %v2009_v38, %s3608_s18  ;;  %v3316_v38 = vpack.c.bf16 %v2499_v37, %v2498_v15 }
0x2090   :  { %v2012_v39 = vpop.permute.xlu1 %2011 }
0x2091   :  { %v2014_v41 = vadd.f32 %v2012_v39, %v1925_v8 }
0x2093   :  { %3445 = vtanh.f32 %v2014_v41 }
0x209d   :  { %v3446_v42 = vpop.eup %3445 }
0x209e   :  { %2018 = vrot.lane.b32.xlu0 %v3446_v42, %s3609_s24 }
0x2110   :  { %v2019_v44 = vpop.permute.xlu0 %2018 }
0x2111   :  { %v2021_v46 = vmul.f32 %v2019_v44, %v2016_v43 }
0x2113   :  { %v2023_v47 = vadd.f32 %v2022_v45, %v2021_v46  ;;  %v4150_v46 = vld [vmem:[%s4253_s9] ss:$0 sm:$0xff] }
0x2115   :  { %2025 = vrot.lane.b32.xlu1 %v2023_v47, %s3609_s24 }
0x2187   :  { %v2026_v61 = vpop.permute.xlu1 %2025 }
0x2188   :  { %2028 = vst.msk [vmem:[#allocation3 + $0x20] sm:$0xff] %vm105_vm1, %v2026_v61  ;;  %3128 = vmatmul.mubr.msk.f32.vlgmr.msra.gmra.mrb[22].mxu1 %vm105_vm1, %v2026_v61 }
0x2189   :  { %3304 = vmatpush3.bf16.msra.mxu1 %v3999_v27  ;;  %3149 = vmatprep.mubr.msk.f32.mxu1 %vm3606_vm2, %v3607_v20 }
0x218a   :  { %3305 = vmatprep.subr.bf16.mxu1 %v3605_v10 }
0x218d   :  { %3307 = vmatpush3.bf16.msra.mxu1 %v4010_v31 }
0x218e   :  { %3317 = vmatprep.subr.bf16.mxu1 %v3316_v38 }
0x218f   :  { %v2346_v12 = vld [vmem:[#allocation3 + $0x20] sm:$0xff] }
0x225b   :  { %v2098_v48 = vpop.f32.mrb[22].mxu1 }
0x225c   :  { %v2099_v49 = vadd.f32 %v4038_v40, %v2098_v48  ;;  %v3129_v50 = vpop.f32.mrb[23].mxu1 }
0x225d   :  { %v2501_v50 = vld [vmem:[%s4254_s10 + $0x18] sm:$0xff] }
0x225e   :  { %2110 = vrot.lane.b32.xlu0 %v2099_v49, %s3608_s18  ;;  %v2102_v53 = vadd.f32 %v2099_v49, %v2029_v52  ;;  %v2500_v49 = vld [vmem:[%s4254_s10 + $0x10] sm:$0xff] }
0x2260   :  { %v2759_v54 = vmul.f32 -1.442695, %v2102_v53 }
0x2262   :  { %3447 = vpow2.f32 %v2759_v54  ;;  %v3320_v54 = vpack.c.bf16 %v2501_v50, %v2500_v49 }
0x226c   :  { %v3448_v55 = vpop.eup %3447 }
0x226d   :  { %v2106_v56 = vadd.f32 1.0, %v3448_v55 }
0x226f   :  { %3449 = vrcp.f32 %v2106_v56 }
0x2279   :  { %v3450_v27 = vpop.eup %3449 }
0x227a   :  { %v2120_v63 = vsub.f32 1.0, %v3450_v27  ;;  %v2126_v1 = vmul.f32 %v3450_v27, %v2023_v47 }
0x22d0   :  { %v2111_v57 = vpop.permute.xlu0 %2110 }
0x22d1   :  { %v2113_v20 = vmul.f32 %v3450_v27, %v2111_v57 }
0x22d3   :  { %2115 = vrot.lane.b32.xlu1 %v2113_v20, %s3608_s18 }
0x2345   :  { %v2116_v10 = vpop.permute.xlu1 %2115 }
0x2346   :  { %v2118_v31 = vadd.f32 %v2116_v10, %v2029_v52 }
0x2348   :  { %3451 = vtanh.f32 %v2118_v31 }
0x2352   :  { %v3452_v62 = vpop.eup %3451 }
0x2353   :  { %2122 = vrot.lane.b32.xlu0 %v3452_v62, %s3609_s24 }
0x23c5   :  { %v2123_v0 = vpop.permute.xlu0 %2122 }
0x23c6   :  { %v2125_v21 = vmul.f32 %v2123_v0, %v2120_v63  ;;  %v4175_v0 = vld [vmem:[#allocation5] ss:$0 sm:$0xff] }
0x23c8   :  { %v2127_v51 = vadd.f32 %v2126_v1, %v2125_v21 }
0x23ca   :  { %2129 = vrot.lane.b32.xlu1 %v2127_v51, %s3609_s24 }
0x243c   :  { %v2130_v5 = vpop.permute.xlu1 %2129 }
0x243d   :  { %2132 = vst.msk [vmem:[#allocation3 + $0x28] sm:$0xff] %vm105_vm1, %v2130_v5  ;;  %3139 = vmatmul.mubr.msk.f32.vlgmr.msra.gmra.mrb[28].mxu0 %vm105_vm1, %v2130_v5 }
0x243e   :  { %3311 = vmatpush3.bf16.msra.mxu0 %v3308_v60  ;;  %3160 = vmatprep.mubr.msk.f32.mxu0 %vm105_vm1, %v2342_v6 }
0x243f   :  { %3313 = vmatprep.subr.bf16.mxu0 %v3312_v4 }
0x2442   :  { %3315 = vmatpush3.bf16.msra.mxu0 %v3312_v4 }
0x2444   :  { %v2347_v13 = vld [vmem:[#allocation3 + $0x28] sm:$0xff] }
0x2445   :  { %3161 = vmatmul.mubr.msk.f32.vlgmr.msra.gmra.mrb[30].mxu0 %vm105_vm1, %v2343_v7 }
0x2446   :  { %3163 = vmatprep.mubr.msk.f32.mxu0 %vm105_vm1, %v2344_v9 }
0x2449   :  { %3164 = vmatmul.mubr.msk.f32.gmra.mrb[32].mxu0 %vm105_vm1, %v2345_v11 }
0x244a   :  { %3166 = vmatprep.mubr.msk.f32.mxu0 %vm105_vm1, %v2346_v12 }
0x244d   :  { %3167 = vmatmul.mubr.msk.f32.gmra.mrb[34].mxu0 %vm105_vm1, %v2347_v13 }
0x2510   :  { %v2202_v14 = vpop.f32.mrb[28].mxu0 }
0x2511   :  { %v2203_v16 = vadd.f32 %v4038_v40, %v2202_v14  ;;  %v3140_v17 = vpop.f32.mrb[29].mxu0 }
0x2513   :  { %2214 = vrot.lane.b32.xlu0 %v2203_v16, %s3608_s18  ;;  %v2206_v28 = vadd.f32 %v2203_v16, %v2133_v26 }
0x2515   :  { %v2761_v29 = vmul.f32 -1.442695, %v2206_v28 }
0x2517   :  { %3453 = vpow2.f32 %v2761_v29 }
0x2518   :  { %v3162_v18 = vpop.f32.mrb[30].mxu0 }
0x2519   :  { %v2451_v19 = vpop.f32.mrb[31].mxu0  ;;  %v2457_v61 = vadd.f32 %v3162_v18, %v4150_v46 }
0x251a   :  { %v2452_v47 = vadd.f32 %v4150_v46, %v2451_v19  ;;  %v2237_v19 = vld [vmem:[#allocation4 + $0x38] sm:$0xff] }
0x251c   :  { %v3165_v22 = vpop.f32.mrb[32].mxu0 }
0x251d   :  { %v2461_v23 = vpop.f32.mrb[33].mxu0  ;;  %v2467_v52 = vadd.f32 %v3165_v22, %v4150_v46 }
0x251e   :  { %v2462_v48 = vadd.f32 %v4150_v46, %v2461_v23 }
0x2520   :  { %v3168_v24 = vpop.f32.mrb[34].mxu0 }
0x2521   :  { %v2471_v25 = vpop.f32.mrb[35].mxu0  ;;  %v3454_v30 = vpop.eup %3453  ;;  %v2477_v27 = vadd.f32 %v3168_v24, %v4150_v46 }
0x2522   :  { %v2210_v32 = vadd.f32 1.0, %v3454_v30  ;;  %v2472_v53 = vadd.f32 %v4150_v46, %v2471_v25 }
0x2524   :  { %3455 = vrcp.f32 %v2210_v32 }
0x252e   :  { %v3456_v8 = vpop.eup %3455 }
0x252f   :  { %v2224_v41 = vsub.f32 1.0, %v3456_v8  ;;  %v2230_v43 = vmul.f32 %v3456_v8, %v2127_v51 }
0x2585   :  { %v2215_v33 = vpop.permute.xlu0 %2214 }
0x2586   :  { %v2217_v34 = vmul.f32 %v3456_v8, %v2215_v33 }
0x2588   :  { %2219 = vrot.lane.b32.xlu1 %v2217_v34, %s3608_s18 }
0x25fa   :  { %v2220_v35 = vpop.permute.xlu1 %2219 }
0x25fb   :  { %v2222_v36 = vadd.f32 %v2220_v35, %v2133_v26 }
0x25fd   :  { %3457 = vtanh.f32 %v2222_v36 }
0x25fe   :  { %3459 = vtanh.f32 %v2452_v47 }
0x25ff   :  { %3461 = vtanh.f32 %v2457_v61 }
0x2600   :  { %3463 = vtanh.f32 %v2462_v48 }
0x2601   :  { %3465 = vtanh.f32 %v2467_v52 }
0x2602   :  { %3467 = vtanh.f32 %v2472_v53 }
0x2603   :  { %3469 = vtanh.f32 %v2477_v27 }
0x2607   :  { %v3458_v39 = vpop.eup %3457 }
0x2608   :  { %2226 = vrot.lane.b32.xlu0 %v3458_v39, %s3609_s24  ;;  %v3460_v56 = vpop.eup %3459 }
0x2609   :  { %v3462_v57 = vpop.eup %3461 }
0x260a   :  { %v3464_v10 = vpop.eup %3463 }
0x260b   :  { %v3466_v31 = vpop.eup %3465 }
0x260c   :  { %v3468_v58 = vpop.eup %3467 }
0x260d   :  { %v3470_v59 = vpop.eup %3469 }
0x267a   :  { %v2227_v42 = vpop.permute.xlu0 %2226 }
0x267b   :  { %v2229_v44 = vmul.f32 %v2227_v42, %v2224_v41 }
0x267d   :  { %v4143_v45 = vadd.f32 %v2230_v43, %v2229_v44 }
0x267f   :  { %2233 = vrot.lane.b32.xlu1 %v4143_v45, %s3609_s24 }
0x26f1   :  { %v2234_v55 = vpop.permute.xlu1 %2233 }
0x26f2   :  { %2236 = vst.msk [vmem:[#allocation3 + $0x30] sm:$0xff] %vm105_vm1, %v2234_v55  ;;  %3150 = vmatmul.mubr.msk.f32.vlgmr.msra.gmra.mrb[24].mxu1 %vm105_vm1, %v2234_v55 }
0x26f3   :  { %3319 = vmatpush3.bf16.msra.mxu1 %v3316_v38  ;;  %3180 = vmatprep.mubr.msk.f32.mxu1 %vm105_vm1, %v3460_v56 }
0x26f4   :  { %3321 = vmatprep.subr.bf16.mxu1 %v3320_v54 }
0x26f7   :  { %3323 = vmatpush3.bf16.msra.mxu1 %v3320_v54 }
0x26f9   :  { %v2348_v20 = vld [vmem:[#allocation3 + $0x30] sm:$0xff] }
0x26fa   :  { %3181 = vmatmul.mubr.msk.f32.vlgmr.msra.gmra.mrb[26].mxu1 %vm105_vm1, %v3462_v57  ;;  %3169 = vmatprep.mubr.msk.f32.mxu0 %vm105_vm1, %v2348_v20 }
0x26fb   :  { %3183 = vmatprep.mubr.msk.f32.mxu1 %vm105_vm1, %v3464_v10 }
0x26fe   :  { %3184 = vmatmul.mubr.msk.f32.gmra.mrb[28].mxu1 %vm105_vm1, %v3466_v31 }
0x26ff   :  { %3186 = vmatprep.mubr.msk.f32.mxu1 %vm105_vm1, %v3468_v58 }
0x2702   :  { %3187 = vmatmul.mubr.msk.f32.gmra.mrb[30].mxu1 %vm105_vm1, %v3470_v59 }
0x27c5   :  { %v2306_v60 = vpop.f32.mrb[24].mxu1 }
0x27c6   :  { %v2307_v62 = vadd.f32 %v4038_v40, %v2306_v60  ;;  %v3151_v63 = vpop.f32.mrb[25].mxu1 }
0x27c8   :  { %2318 = vrot.lane.b32.xlu0 %v2307_v62, %s3608_s18  ;;  %v2310_v22 = vadd.f32 %v2307_v62, %v2237_v19 }
0x27ca   :  { %v2763_v23 = vmul.f32 -1.442695, %v2310_v22 }
0x27cc   :  { %3471 = vpow2.f32 %v2763_v23 }
0x27cd   :  { %v3182_v1 = vpop.f32.mrb[26].mxu1 }
0x27ce   :  { %v2605_v21 = vadd.f32 %v3182_v1, %v4175_v0  ;;  %v2599_v51 = vpop.f32.mrb[27].mxu1 }
0x27cf   :  { %v2600_v2 = vadd.f32 %v4175_v0, %v2599_v51 }
0x27d0   :  { %v2639_v3 = vmax.f32 %v2605_v21, 0.0 }
0x27d1   :  { %v2638_v4 = vmax.f32 %v2600_v2, 0.0  ;;  %v3185_v5 = vpop.f32.mrb[28].mxu1 }
0x27d2   :  { %2648 = vst.msk [vmem:[%s4256_s12 + $0x8] sm:$0xff] %vm2646_vm4, %v2639_v3  ;;  %v2615_v40 = vadd.f32 %v3185_v5, %v4175_v0  ;;  %v2609_v6 = vpop.f32.mrb[29].mxu1 }
0x27d3   :  { %2647 = vst.msk [vmem:[%s4256_s12] sm:$0xff] %vm2646_vm4, %v2638_v4  ;;  %v2610_v7 = vadd.f32 %v4175_v0, %v2609_v6 }
0x27d4   :  { %v2641_v9 = vmax.f32 %v2615_v40, 0.0 }
0x27d5   :  { %v2640_v11 = vmax.f32 %v2610_v7, 0.0  ;;  %v3188_v12 = vpop.f32.mrb[30].mxu1 }
0x27d6   :  { %2650 = vst.msk [vmem:[%s4256_s12 + $0x18] sm:$0xff] %vm2646_vm4, %v2641_v9  ;;  %v2625_v13 = vadd.f32 %v3188_v12, %v4175_v0  ;;  %v2619_v14 = vpop.f32.mrb[31].mxu1  ;;  %v3472_v24 = vpop.eup %3471 }
0x27d7   :  { %2649 = vst.msk [vmem:[%s4256_s12 + $0x10] sm:$0xff] %vm2646_vm4, %v2640_v11  ;;  %v2620_v16 = vadd.f32 %v4175_v0, %v2619_v14  ;;  %v2314_v25 = vadd.f32 1.0, %v3472_v24 }
0x27d8   :  { %v2643_v17 = vmax.f32 %v2625_v13, 0.0 }
0x27d9   :  { %v2642_v18 = vmax.f32 %v2620_v16, 0.0  ;;  %3473 = vrcp.f32 %v2314_v25 }
0x27da   :  { %2652 = vst.msk [vmem:[%s4256_s12 + $0x28] sm:$0xff] %vm2646_vm4, %v2643_v17 }
0x27db   :  { %2651 = vst.msk [vmem:[%s4256_s12 + $0x20] sm:$0xff] %vm2646_vm4, %v2642_v18 }
0x27e3   :  { %v3474_v26 = vpop.eup %3473 }
0x27e4   :  { %v2328_v33 = vsub.f32 1.0, %v3474_v26  ;;  %v2334_v35 = vmul.f32 %v3474_v26, %v4143_v45 }
0x283a   :  { %v2319_v28 = vpop.permute.xlu0 %2318 }
0x283b   :  { %v2321_v29 = vmul.f32 %v3474_v26, %v2319_v28 }
0x283d   :  { %2323 = vrot.lane.b32.xlu1 %v2321_v29, %s3608_s18  ;;  %s3611_s18 = smov [#allocation14]  }
0x28af   :  { %v2324_v30 = vpop.permute.xlu1 %2323 }
0x28b0   :  { %v2326_v32 = vadd.f32 %v2324_v30, %v2237_v19 }
0x28b2   :  { %3475 = vtanh.f32 %v2326_v32 }
0x28bc   :  { %v3476_v8 = vpop.eup %3475 }
0x28bd   :  { %2330 = vrot.lane.b32.xlu0 %v3476_v8, %s3609_s24 }
0x292f   :  { %v2331_v34 = vpop.permute.xlu0 %2330 }
0x2930   :  { %v2333_v36 = vmul.f32 %v2331_v34, %v2328_v33 }
0x2932   :  { %v2335_v15 = vadd.f32 %v2334_v35, %v2333_v36 }
0x2934   :  { %2337 = vrot.lane.b32.xlu1 %v2335_v15, %s3609_s24  ;;  %s2669_s24 = sshll.u32 %s3611_s18, 4  ;;  %s2670_s24 = int_to_ptr.vmem [resolvable:$true] %s2669_s24 }
0x2935   :  { %s3569_s28 = scalar_lea.vmem %s2670_s24, 256  ;;  %p3574_p5 = scmp.lt.s32.totalorder %s2670_s24, %s2670_s24 }
0x2936   :  { %p3570_p4 = scmp.ne.s32.totalorder %s2670_s24, %s3569_s28  ;;  %p3575_p6 = scmp.lt.s32.totalorder %s3569_s28, %s3569_s28 }
0x2938   :  { %p3576_p7 = por %p3575_p6, %p3574_p5 }
0x293a   :  { %p3577_p8 = pnand %p3576_p7, %p3570_p4 }
0x29a6   :  { %v2338_v37 = vpop.permute.xlu1 %2337 }
0x29a7   :  { %2340 = vst.msk [vmem:[#allocation3 + $0x38] sm:$0xff] %vm105_vm1, %v2338_v37  ;;  %2341 = vst.msk [vmem:[#allocation2 + $0x8] sm:$0xff] %vm105_vm1, %v2338_v37 }
0x29ae   :  { %v2349_v38 = vld [vmem:[#allocation3 + $0x38] sm:$0xff] }
0x29af   :  { %v2659_v39 = vld [vmem:[#allocation2 + $0x8] sm:$0xff]  ;;  %3170 = vmatmul.mubr.msk.f32.gmra.mrb[36].mxu0 %vm105_vm1, %v2349_v38 }
0x29b0   :  { %2661 = vst.msk [vmem:[#allocation14 + $0x8] sm:$0xff] %vm105_vm1, %v2659_v39 }
0x2a82   :  { %v3171_v41 = vpop.f32.mrb[36].mxu0 }
0x2a83   :  { %v2487_v42 = vadd.f32 %v3171_v41, %v4150_v46  ;;  %v2481_v43 = vpop.f32.mrb[37].mxu0 }
0x2a84   :  { %v2482_v44 = vadd.f32 %v4150_v46, %v2481_v43 }
0x2a86   :  { %3477 = vtanh.f32 %v2482_v44 }
0x2a87   :  { %3479 = vtanh.f32 %v2487_v42 }
0x2a90   :  { %v3478_v45 = vpop.eup %3477 }
0x2a91   :  { %v3480_v47 = vpop.eup %3479  ;;  %3189 = vmatprep.mubr.msk.f32.mxu1 %vm105_vm1, %v3478_v45 }
0x2a92   :  { %3190 = vmatmul.mubr.msk.f32.gmra.mrb[32].mxu1 %vm105_vm1, %v3480_v47 }
0x2a93   :  { %3580 = shalt.err (!%p3577_p8)
}
0x2a94   :  { %s3581_s7 = scalar_lea.hbm %s4257_s13, 256 }
0x2a95   :  { %p3582_p9 = scmp.ne.s32.totalorder %s4257_s13, %s3581_s7  ;;  %p3585_p10 = scmp.lt.u32.totalorder %s3581_s7, %s4257_s13 }
0x2a97   :  { %p3587_p11 = pnand %p3585_p10, %p3582_p9 }
0x2a99   :  { %3590 = shalt.err (!%p3587_p11)
}
0x2a9a   :  { %2675 = dma.vmem_to_hbm [thread:$0]  %s2670_s24, 256, %s4257_s13, [#allocation8], %s3601_s21, %s3601_s21, %s3602_s22  }
0x2b65   :  { %v3191_v46 = vpop.f32.mrb[32].mxu1 }
0x2b66   :  { %v2635_v61 = vadd.f32 %v3191_v46, %v4175_v0  ;;  %v2629_v48 = vpop.f32.mrb[33].mxu1 }
0x2b67   :  { %v2630_v49 = vadd.f32 %v4175_v0, %v2629_v48 }
0x2b68   :  { %v2645_v50 = vmax.f32 %v2635_v61, 0.0 }
0x2b69   :  { %v2644_v52 = vmax.f32 %v2630_v49, 0.0 }
0x2b6a   :  { %2654 = vst.msk [vmem:[%s4256_s12 + $0x38] sm:$0xff] %vm2646_vm4, %v2645_v50 }
0x2b6b   :  { %2653 = vst.msk [vmem:[%s4256_s12 + $0x30] sm:$0xff] %vm2646_vm4, %v2644_v52 }
0x2b6c   :  { %3597 = dma.done.wait [#allocation8], 256  }
0x2b6d   :  { %3598 = vsyncadd [#allocation8], 4294967040 }
0x2b6e   :  { %2681 = vsyncpa [#allocation7], 1 }
0x2b6f   :  { %2682 = vsyncpa [#allocation10], 1 }
0x2b70   :  { %2683 = vsyncpa [#allocation13], 1 }
0x2b71   :  { %2684 = vsyncpa [#allocation8], 1 }

</bundles_post_ra>
